<compile_context>
chip_gen: v7x
topology: tpu7x:2x2x1
jax: 0.10.0
libtpu: 0.0.40
codegen_flags: <defaults>
</compile_context>

<pallas_src>
import jax
import jax.numpy as jnp
from jax import lax
from jax.experimental import pallas as pl
from jax.experimental.pallas import tpu as pltpu

LEAKY_SLOPE = 0.01  # PyTorch nn.LeakyReLU() default
BN_EPS = 1e-5


# ----------------------------------------------------------------------------
# Fused kernel: 1x1 conv + BN + LeakyReLU  ->  padded VMEM scratch
#               -> 3x3 conv (3 matmuls) + BN + LeakyReLU + residual add
# ----------------------------------------------------------------------------
def fused_residual_kernel(x_ref, xtop_ref, xbot_ref,
                          w1_ref, s1_ref, b1_ref,
                          w2_ref, s2_ref, b2_ref,
                          o_ref, ypad_ref):
    # x_ref    : (1, TH*W, C)   bf16   main row-tile (also the residual)
    # xtop_ref : (1, W, C)      bf16   row above the tile (clamped at border)
    # xbot_ref : (1, W, C)      bf16   row below the tile (clamped at border)
    # w1_ref   : (C, Cmid)      bf16
    # s1/b1    : (1, Cmid)      f32    folded BN scale/shift of stage 1
    # w2_ref   : (3, 3*Cmid, C) bf16   [dy, dx*Cmid+c, o]
    # s2/b2    : (1, C)         f32    folded BN scale/shift of stage 2
    # o_ref    : (1, TH*W, C)   f32
    # ypad_ref : (TH+2, W+2, Cmid) bf16 VMEM scratch (spatially padded y1 tile)
    THp2, Wp2, Cmid = ypad_ref.shape
    TH, W = THp2 - 2, Wp2 - 2
    C = o_ref.shape[-1]

    t = pl.program_id(1)
    num_t = pl.num_programs(1)

    def conv1(x2d):  # (M, C) bf16 -> (M, Cmid) f32, with folded BN + LeakyReLU
        y = jnp.dot(x2d, w1_ref[...], preferred_element_type=jnp.float32)
        y = y * s1_ref[...] + b1_ref[...]
        return jnp.where(y > 0, y, LEAKY_SLOPE * y)

    # ---- stage 1: 1x1 conv into the padded VMEM scratch --------------------
    ypad_ref[...] = jnp.zeros_like(ypad_ref)          # zero borders / halos

    x = x_ref[0]                                      # (TH*W, C) bf16
    y1 = conv1(x)                                     # (TH*W, Cmid) f32
    ypad_ref[1:TH + 1, 1:W + 1, :] = (
        y1.astype(ypad_ref.dtype).reshape(TH, W, Cmid))

    @pl.when(t > 0)            # top halo row = last row of the previous tile
    def _():
        yt = conv1(xtop_ref[0])                       # (W, Cmid)
        ypad_ref[0, 1:W + 1, :] = yt.astype(ypad_ref.dtype)

    @pl.when(t < num_t - 1)    # bottom halo row = first row of the next tile
    def _():
        yb = conv1(xbot_ref[0])
        ypad_ref[TH + 1, 1:W + 1, :] = yb.astype(ypad_ref.dtype)

    # ---- stage 2: 3x3 conv as 3 wide matmuls (W-axis im2col) ----------------
    yp = ypad_ref[...]                                # (TH+2, W+2, Cmid) bf16
    patch = jnp.concatenate(
        [yp[:, 0:W, :], yp[:, 1:W + 1, :], yp[:, 2:W + 2, :]], axis=-1)
    patch = patch.reshape((TH + 2) * W, 3 * Cmid)     # dy taps = cheap row offsets

    acc = jnp.zeros((TH * W, C), jnp.float32)
    for dy in range(3):                               # 3 matmuls, K = 3*Cmid
        acc = acc + jnp.dot(patch[dy * W:(dy + TH) * W, :], w2_ref[dy],
                            preferred_element_type=jnp.float32)

    z = acc * s2_ref[...] + b2_ref[...]
    z = jnp.where(z > 0, z, LEAKY_SLOPE * z)
    o_ref[0] = z + x.astype(jnp.float32)              # residual add in f32


# ----------------------------------------------------------------------------
# Row-tile picker (keeps per-step working set modest; prefers divisors of H)
# ----------------------------------------------------------------------------
def _pick_row_tile(H, W, C, Cmid, target_bytes=2 * 1024 * 1024):
    best = H
    for th in range(1, H + 1):
        if H % th:
            continue
        est = 2 * (th * W * C * 2)             # x tile (bf16, double buffered)
        est += 2 * (th * W * C * 4)            # out tile (f32, double buffered)
        est += (th + 2) * (W + 2) * Cmid * 2   # padded y1 scratch (bf16)
        est += th * W * C * 4                  # f32 accumulator headroom
        if est <= target_bytes and (th * W) % 8 == 0:
            best = th
    return best


# ----------------------------------------------------------------------------
# Wrapper
# ----------------------------------------------------------------------------
def residual_forward(x_nchw, params, row_tile=None):
    """Forward of the Darknet53 `residual` block.  x_nchw: (N, C, H, W) f32."""
    x = jnp.transpose(x_nchw, (0, 2, 3, 1))           # NHWC (boundary transpose)
    N, H, W, C = x.shape
    Cmid = C // 2

    if row_tile is None or H % row_tile != 0:
        row_tile = _pick_row_tile(H, W, C, Cmid)
    TH = row_tile
    T = H // TH
    # TODO(synk): W (and TH*W) should be a multiple of 8 for clean TPU tiling;
    #             odd widths (e.g. 13) fall back to compiler-padded blocks.

    xb = x.astype(jnp.bfloat16).reshape(N, H * W, C)  # free reshape, bf16 traffic
    w1 = params["w1"].astype(jnp.bfloat16)                         # (C, Cmid)
    w2 = params["w2"].astype(jnp.bfloat16).reshape(3, 3 * Cmid, C)  # (3,3*Cmid,C)
    s1, b1 = params["scale1"], params["shift1"]
    s2, b2 = params["scale2"], params["shift2"]

    out = pl.pallas_call(
        fused_residual_kernel,
        out_shape=jax.ShapeDtypeStruct((N, H * W, C), jnp.float32),
        grid=(N, T),
        in_specs=[
            # main row-tile of x (conv input + residual)
            pl.BlockSpec((1, TH * W, C), lambda n, t: (n, t, 0)),
            # halo rows (clamped at the image borders; masked in-kernel)
            pl.BlockSpec((1, W, C),
                         lambda n, t: (n, jnp.maximum(t * TH - 1, 0), 0)),
            pl.BlockSpec((1, W, C),
                         lambda n, t: (n, jnp.minimum((t + 1) * TH, H - 1), 0)),
            # weights / folded BN params (resident across the grid)
            pl.BlockSpec((C, Cmid), lambda n, t: (0, 0)),
            pl.BlockSpec((1, Cmid), lambda n, t: (0, 0)),
            pl.BlockSpec((1, Cmid), lambda n, t: (0, 0)),
            pl.BlockSpec((3, 3 * Cmid, C), lambda n, t: (0, 0, 0)),
            pl.BlockSpec((1, C), lambda n, t: (0, 0)),
            pl.BlockSpec((1, C), lambda n, t: (0, 0)),
        ],
        out_specs=pl.BlockSpec((1, TH * W, C), lambda n, t: (n, t, 0)),
        scratch_shapes=[pltpu.VMEM((TH + 2, W + 2, Cmid), jnp.bfloat16)],
        compiler_params=pltpu.CompilerParams(
            dimension_semantics=("parallel", "parallel"),
            vmem_limit_bytes=32 * 1024 * 1024),
    )(xb, xb, xb, w1, s1, b1, w2, s2, b2)

    return jnp.transpose(out.reshape(N, H, W, C), (0, 3, 1, 2))  # back to NCHW


# ----------------------------------------------------------------------------
# Deterministic parameter init (synthetic; BN folded to scale/shift)
# ----------------------------------------------------------------------------
def init_params(key, in_chan):
    Cmid = in_chan // 2
    ks = jax.random.split(key, 10)

    def fold_bn(gamma, beta, mean, var):
        scale = gamma / jnp.sqrt(var + BN_EPS)
        shift = beta - mean * scale
        return scale[None, :], shift[None, :]

    w1 = 0.1 * jax.random.normal(ks[0], (in_chan, Cmid), jnp.float32)
    g1 = 1.0 + 0.1 * jax.random.normal(ks[1], (Cmid,), jnp.float32)
    b1 = 0.1 * jax.random.normal(ks[2], (Cmid,), jnp.float32)
    m1 = 0.1 * jax.random.normal(ks[3], (Cmid,), jnp.float32)
    v1 = jnp.abs(jax.random.normal(ks[4], (Cmid,), jnp.float32)) + 0.5
    scale1, shift1 = fold_bn(g1, b1, m1, v1)

    w2 = 0.1 * jax.random.normal(ks[5], (3, 3, Cmid, in_chan), jnp.float32)
    g2 = 1.0 + 0.1 * jax.random.normal(ks[6], (in_chan,), jnp.float32)
    b2 = 0.1 * jax.random.normal(ks[7], (in_chan,), jnp.float32)
    m2 = 0.1 * jax.random.normal(ks[8], (in_chan,), jnp.float32)
    v2 = jnp.abs(jax.random.normal(ks[9], (in_chan,), jnp.float32)) + 0.5
    scale2, shift2 = fold_bn(g2, b2, m2, v2)

    return dict(w1=w1, scale1=scale1, shift1=shift1,
                w2=w2, scale2=scale2, shift2=shift2)


# ----------------------------------------------------------------------------
# Pure-JAX f32 reference for correctness check
# ----------------------------------------------------------------------------
def reference_forward(x_nchw, p):
    x = jnp.transpose(x_nchw, (0, 2, 3, 1)).astype(jnp.float32)
    C = x.shape[-1]
    Cmid = C // 2
    dn = ("NHWC", "HWIO", "NHWC")

    y = lax.conv_general_dilated(x, p["w1"].reshape(1, 1, C, Cmid),
                                 (1, 1), "VALID", dimension_numbers=dn)
    y = y * p["scale1"] + p["shift1"]
    y = jnp.where(y > 0, y, LEAKY_SLOPE * y)

    y = lax.conv_general_dilated(y, p["w2"], (1, 1),
                                 ((1, 1), (1, 1)), dimension_numbers=dn)
    y = y * p["scale2"] + p["shift2"]
    y = jnp.where(y > 0, y, LEAKY_SLOPE * y)

    return jnp.transpose(y + x, (0, 3, 1, 2))


if __name__ == "__main__":
    key = jax.random.PRNGKey(0)
    k_x, k_p = jax.random.split(key)

    N, C, H, W = 2, 4, 16, 16
    x = jax.random.normal(k_x, (N, C, H, W), jnp.float32)
    params = init_params(k_p, C)

    ref = reference_forward(x, params)
    fwd = jax.jit(residual_forward, static_argnames=("row_tile",))

    # row_tile=8 exercises the multi-tile halo paths; None -> auto (single tile)
    for rt in (8, None):
        out = jax.block_until_ready(fwd(x, params, row_tile=rt))
        assert out.shape == (N, C, H, W)
        err = float(jnp.max(jnp.abs(out - ref)))
        assert jnp.allclose(out, ref, atol=3e-2, rtol=3e-2), \
            f"mismatch vs reference (row_tile={rt}, max_abs_err={err})"

    print("KERNEL_OK")
</pallas_src>

<mosaic_0001>
module attributes {stable_mosaic.version = 11 : i64} {
  func.func @fused_residual_kernel(%arg0: i32, %arg1: i32, %arg2: memref<1x128x4xbf16, #tpu.memory_space<vmem>>, %arg3: memref<1x16x4xbf16, #tpu.memory_space<vmem>>, %arg4: memref<1x16x4xbf16, #tpu.memory_space<vmem>>, %arg5: memref<4x2xbf16, #tpu.memory_space<vmem>>, %arg6: memref<1x2xf32, #tpu.memory_space<vmem>>, %arg7: memref<1x2xf32, #tpu.memory_space<vmem>>, %arg8: memref<3x6x4xbf16, #tpu.memory_space<vmem>>, %arg9: memref<1x4xf32, #tpu.memory_space<vmem>>, %arg10: memref<1x4xf32, #tpu.memory_space<vmem>>, %arg11: memref<1x128x4xf32, #tpu.memory_space<vmem>>, %arg12: memref<10x18x2xbf16, #tpu.memory_space<vmem>>) attributes {dimension_semantics = [#tpu.dimension_semantics<parallel>, #tpu.dimension_semantics<parallel>], iteration_bounds = array<i64: 2, 2>, scalar_prefetch = 0 : i64, scratch_operands = 1 : i64, tpu.core_type = #tpu.core_type<tc>, window_params = [{transform_indices = @transform_0, window_bounds = array<i64: 1, 128, 4>}, {transform_indices = @transform_1, window_bounds = array<i64: 1, 16, 4>}, {transform_indices = @transform_2, window_bounds = array<i64: 1, 16, 4>}, {pipeline_mode = #tpu.pipeline_mode<synchronous>, transform_indices = @transform_3, window_bounds = array<i64: 4, 2>}, {pipeline_mode = #tpu.pipeline_mode<synchronous>, transform_indices = @transform_4, window_bounds = array<i64: 1, 2>}, {pipeline_mode = #tpu.pipeline_mode<synchronous>, transform_indices = @transform_5, window_bounds = array<i64: 1, 2>}, {pipeline_mode = #tpu.pipeline_mode<synchronous>, transform_indices = @transform_6, window_bounds = array<i64: 3, 6, 4>}, {pipeline_mode = #tpu.pipeline_mode<synchronous>, transform_indices = @transform_7, window_bounds = array<i64: 1, 4>}, {pipeline_mode = #tpu.pipeline_mode<synchronous>, transform_indices = @transform_8, window_bounds = array<i64: 1, 4>}, {transform_indices = @transform_9, window_bounds = array<i64: 1, 128, 4>}]} {
    %cst = arith.constant 0.000000e+00 : bf16
    %0 = vector.broadcast %cst : bf16 to vector<10x18x2xbf16>
    %c0 = arith.constant 0 : index
    %c0_0 = arith.constant 0 : index
    %c0_1 = arith.constant 0 : index
    %1 = vector.load %arg12[%c0, %c0_0, %c0_1] : memref<10x18x2xbf16, #tpu.memory_space<vmem>>, vector<10x18x2xbf16>
    tpu.vector_store %arg12[%c0, %c0_0, %c0_1], %0 {strides = array<i32>} : memref<10x18x2xbf16, #tpu.memory_space<vmem>>, vector<10x18x2xbf16>,
    %c0_2 = arith.constant 0 : index
    %c0_3 = arith.constant 0 : index
    %c0_4 = arith.constant 0 : index
    %2 = vector.load %arg2[%c0_2, %c0_3, %c0_4] : memref<1x128x4xbf16, #tpu.memory_space<vmem>>, vector<1x128x4xbf16>
    %3 = vector.shape_cast %2 : vector<1x128x4xbf16> to vector<128x4xbf16>
    %c0_5 = arith.constant 0 : index
    %c0_6 = arith.constant 0 : index
    %4 = vector.load %arg5[%c0_5, %c0_6] : memref<4x2xbf16, #tpu.memory_space<vmem>>, vector<4x2xbf16>
    %cst_7 = arith.constant dense<0.000000e+00> : vector<128x2xf32>
    %5 = tpu.matmul %3, %4, %cst_7 {dimension_numbers = #tpu.dot_dimension_numbers<[1], [0], [0], [1], [0, 0, 1, 1], [], []>} : vector<128x4xbf16>, vector<4x2xbf16>, vector<128x2xf32> -> vector<128x2xf32>
    %c0_8 = arith.constant 0 : index
    %c0_9 = arith.constant 0 : index
    %6 = vector.load %arg6[%c0_8, %c0_9] : memref<1x2xf32, #tpu.memory_space<vmem>>, vector<1x2xf32>
    %7 = vector.broadcast %6 : vector<1x2xf32> to vector<128x2xf32>
    %8 = arith.mulf %5, %7 : vector<128x2xf32>
    %c0_10 = arith.constant 0 : index
    %c0_11 = arith.constant 0 : index
    %9 = vector.load %arg7[%c0_10, %c0_11] : memref<1x2xf32, #tpu.memory_space<vmem>>, vector<1x2xf32>
    %10 = vector.broadcast %9 : vector<1x2xf32> to vector<128x2xf32>
    %11 = arith.addf %8, %10 : vector<128x2xf32>
    %cst_12 = arith.constant 0.000000e+00 : f32
    %12 = vector.broadcast %cst_12 : f32 to vector<128x2xf32>
    %13 = arith.cmpf ogt, %11, %12 : vector<128x2xf32>
    %cst_13 = arith.constant 0.00999999977 : f32
    %14 = vector.broadcast %cst_13 : f32 to vector<128x2xf32>
    %15 = arith.mulf %14, %11 : vector<128x2xf32>
    %16 = arith.select %13, %11, %15 : vector<128x2xi1>, vector<128x2xf32>
    %17 = arith.truncf %16 : vector<128x2xf32> to vector<128x2xbf16>
    %18 = vector.shape_cast %17 : vector<128x2xbf16> to vector<8x16x2xbf16>
    %c1 = arith.constant 1 : index
    %c1_14 = arith.constant 1 : index
    %c0_15 = arith.constant 0 : index
    %19 = vector.load %arg12[%c1, %c1_14, %c0_15] : memref<10x18x2xbf16, #tpu.memory_space<vmem>>, vector<8x16x2xbf16>
    tpu.vector_store %arg12[%c1, %c1_14, %c0_15], %18 {strides = array<i32>} : memref<10x18x2xbf16, #tpu.memory_space<vmem>>, vector<8x16x2xbf16>,
    %c0_i32 = arith.constant 0 : i32
    %20 = arith.cmpi sgt, %arg1, %c0_i32 : i32
    %21 = arith.extui %20 : i1 to i32
    %c0_i32_16 = arith.constant 0 : i32
    %22 = arith.cmpi ne, %21, %c0_i32_16 : i32
    scf.if %22 {
      %c0_42 = arith.constant 0 : index
      %c0_43 = arith.constant 0 : index
      %c0_44 = arith.constant 0 : index
      %64 = vector.load %arg3[%c0_42, %c0_43, %c0_44] : memref<1x16x4xbf16, #tpu.memory_space<vmem>>, vector<1x16x4xbf16>
      %65 = vector.shape_cast %64 : vector<1x16x4xbf16> to vector<16x4xbf16>
      %c0_45 = arith.constant 0 : index
      %c0_46 = arith.constant 0 : index
      %66 = vector.load %arg5[%c0_45, %c0_46] : memref<4x2xbf16, #tpu.memory_space<vmem>>, vector<4x2xbf16>
      %cst_47 = arith.constant dense<0.000000e+00> : vector<16x2xf32>
      %67 = tpu.matmul %65, %66, %cst_47 {dimension_numbers = #tpu.dot_dimension_numbers<[1], [0], [0], [1], [0, 0, 1, 1], [], []>} : vector<16x4xbf16>, vector<4x2xbf16>, vector<16x2xf32> -> vector<16x2xf32>
      %c0_48 = arith.constant 0 : index
      %c0_49 = arith.constant 0 : index
      %68 = vector.load %arg6[%c0_48, %c0_49] : memref<1x2xf32, #tpu.memory_space<vmem>>, vector<1x2xf32>
      %69 = vector.broadcast %68 : vector<1x2xf32> to vector<16x2xf32>
      %70 = arith.mulf %67, %69 : vector<16x2xf32>
      %c0_50 = arith.constant 0 : index
      %c0_51 = arith.constant 0 : index
      %71 = vector.load %arg7[%c0_50, %c0_51] : memref<1x2xf32, #tpu.memory_space<vmem>>, vector<1x2xf32>
      %72 = vector.broadcast %71 : vector<1x2xf32> to vector<16x2xf32>
      %73 = arith.addf %70, %72 : vector<16x2xf32>
      %cst_52 = arith.constant 0.000000e+00 : f32
      %74 = vector.broadcast %cst_52 : f32 to vector<16x2xf32>
      %75 = arith.cmpf ogt, %73, %74 : vector<16x2xf32>
      %cst_53 = arith.constant 0.00999999977 : f32
      %76 = vector.broadcast %cst_53 : f32 to vector<16x2xf32>
      %77 = arith.mulf %76, %73 : vector<16x2xf32>
      %78 = arith.select %75, %73, %77 : vector<16x2xi1>, vector<16x2xf32>
      %79 = arith.truncf %78 : vector<16x2xf32> to vector<16x2xbf16>
      %c0_54 = arith.constant 0 : index
      %c1_55 = arith.constant 1 : index
      %c0_56 = arith.constant 0 : index
      %80 = vector.load %arg12[%c0_54, %c1_55, %c0_56] : memref<10x18x2xbf16, #tpu.memory_space<vmem>>, vector<1x16x2xbf16>
      %81 = vector.shape_cast %80 : vector<1x16x2xbf16> to vector<16x2xbf16>
      %82 = vector.shape_cast %79 : vector<16x2xbf16> to vector<1x16x2xbf16>
      tpu.vector_store %arg12[%c0_54, %c1_55, %c0_56], %82 {strides = array<i32>} : memref<10x18x2xbf16, #tpu.memory_space<vmem>>, vector<1x16x2xbf16>,
    } else {
    }
    %c1_i32 = arith.constant 1 : i32
    %23 = arith.cmpi slt, %arg1, %c1_i32 : i32
    %24 = arith.extui %23 : i1 to i32
    %c0_i32_17 = arith.constant 0 : i32
    %25 = arith.cmpi ne, %24, %c0_i32_17 : i32
    scf.if %25 {
      %c0_42 = arith.constant 0 : index
      %c0_43 = arith.constant 0 : index
      %c0_44 = arith.constant 0 : index
      %64 = vector.load %arg4[%c0_42, %c0_43, %c0_44] : memref<1x16x4xbf16, #tpu.memory_space<vmem>>, vector<1x16x4xbf16>
      %65 = vector.shape_cast %64 : vector<1x16x4xbf16> to vector<16x4xbf16>
      %c0_45 = arith.constant 0 : index
      %c0_46 = arith.constant 0 : index
      %66 = vector.load %arg5[%c0_45, %c0_46] : memref<4x2xbf16, #tpu.memory_space<vmem>>, vector<4x2xbf16>
      %cst_47 = arith.constant dense<0.000000e+00> : vector<16x2xf32>
      %67 = tpu.matmul %65, %66, %cst_47 {dimension_numbers = #tpu.dot_dimension_numbers<[1], [0], [0], [1], [0, 0, 1, 1], [], []>} : vector<16x4xbf16>, vector<4x2xbf16>, vector<16x2xf32> -> vector<16x2xf32>
      %c0_48 = arith.constant 0 : index
      %c0_49 = arith.constant 0 : index
      %68 = vector.load %arg6[%c0_48, %c0_49] : memref<1x2xf32, #tpu.memory_space<vmem>>, vector<1x2xf32>
      %69 = vector.broadcast %68 : vector<1x2xf32> to vector<16x2xf32>
      %70 = arith.mulf %67, %69 : vector<16x2xf32>
      %c0_50 = arith.constant 0 : index
      %c0_51 = arith.constant 0 : index
      %71 = vector.load %arg7[%c0_50, %c0_51] : memref<1x2xf32, #tpu.memory_space<vmem>>, vector<1x2xf32>
      %72 = vector.broadcast %71 : vector<1x2xf32> to vector<16x2xf32>
      %73 = arith.addf %70, %72 : vector<16x2xf32>
      %cst_52 = arith.constant 0.000000e+00 : f32
      %74 = vector.broadcast %cst_52 : f32 to vector<16x2xf32>
      %75 = arith.cmpf ogt, %73, %74 : vector<16x2xf32>
      %cst_53 = arith.constant 0.00999999977 : f32
      %76 = vector.broadcast %cst_53 : f32 to vector<16x2xf32>
      %77 = arith.mulf %76, %73 : vector<16x2xf32>
      %78 = arith.select %75, %73, %77 : vector<16x2xi1>, vector<16x2xf32>
      %79 = arith.truncf %78 : vector<16x2xf32> to vector<16x2xbf16>
      %c9 = arith.constant 9 : index
      %c1_54 = arith.constant 1 : index
      %c0_55 = arith.constant 0 : index
      %80 = vector.load %arg12[%c9, %c1_54, %c0_55] : memref<10x18x2xbf16, #tpu.memory_space<vmem>>, vector<1x16x2xbf16>
      %81 = vector.shape_cast %80 : vector<1x16x2xbf16> to vector<16x2xbf16>
      %82 = vector.shape_cast %79 : vector<16x2xbf16> to vector<1x16x2xbf16>
      tpu.vector_store %arg12[%c9, %c1_54, %c0_55], %82 {strides = array<i32>} : memref<10x18x2xbf16, #tpu.memory_space<vmem>>, vector<1x16x2xbf16>,
    } else {
    }
    %c0_18 = arith.constant 0 : index
    %c0_19 = arith.constant 0 : index
    %c0_20 = arith.constant 0 : index
    %26 = vector.load %arg12[%c0_18, %c0_19, %c0_20] : memref<10x18x2xbf16, #tpu.memory_space<vmem>>, vector<10x18x2xbf16>
    %27 = vector.extract_strided_slice %26 {offsets = [0, 0, 0], sizes = [10, 16, 2], strides = [1, 1, 1]} : vector<10x18x2xbf16> to vector<10x16x2xbf16>
    %28 = vector.extract_strided_slice %26 {offsets = [0, 1, 0], sizes = [10, 16, 2], strides = [1, 1, 1]} : vector<10x18x2xbf16> to vector<10x16x2xbf16>
    %29 = vector.extract_strided_slice %26 {offsets = [0, 2, 0], sizes = [10, 16, 2], strides = [1, 1, 1]} : vector<10x18x2xbf16> to vector<10x16x2xbf16>
    %30 = tpu.concatenate %27, %28, %29 in 2 : vector<10x16x2xbf16>, vector<10x16x2xbf16>, vector<10x16x2xbf16> -> vector<10x16x6xbf16>
    %31 = vector.shape_cast %30 : vector<10x16x6xbf16> to vector<160x6xbf16>
    %cst_21 = arith.constant 0.000000e+00 : f32
    %32 = vector.broadcast %cst_21 : f32 to vector<128x4xf32>
    %33 = vector.extract_strided_slice %31 {offsets = [0, 0], sizes = [128, 6], strides = [1, 1]} : vector<160x6xbf16> to vector<128x6xbf16>
    %c0_22 = arith.constant 0 : index
    %c0_23 = arith.constant 0 : index
    %c0_24 = arith.constant 0 : index
    %34 = vector.load %arg8[%c0_22, %c0_23, %c0_24] : memref<3x6x4xbf16, #tpu.memory_space<vmem>>, vector<1x6x4xbf16>
    %35 = vector.shape_cast %34 : vector<1x6x4xbf16> to vector<6x4xbf16>
    %cst_25 = arith.constant dense<0.000000e+00> : vector<128x4xf32>
    %36 = tpu.matmul %33, %35, %cst_25 {dimension_numbers = #tpu.dot_dimension_numbers<[1], [0], [0], [1], [0, 0, 1, 1], [], []>} : vector<128x6xbf16>, vector<6x4xbf16>, vector<128x4xf32> -> vector<128x4xf32>
    %37 = arith.addf %32, %36 : vector<128x4xf32>
    %38 = vector.extract_strided_slice %31 {offsets = [16, 0], sizes = [128, 6], strides = [1, 1]} : vector<160x6xbf16> to vector<128x6xbf16>
    %c1_26 = arith.constant 1 : index
    %c0_27 = arith.constant 0 : index
    %c0_28 = arith.constant 0 : index
    %39 = vector.load %arg8[%c1_26, %c0_27, %c0_28] : memref<3x6x4xbf16, #tpu.memory_space<vmem>>, vector<1x6x4xbf16>
    %40 = vector.shape_cast %39 : vector<1x6x4xbf16> to vector<6x4xbf16>
    %cst_29 = arith.constant dense<0.000000e+00> : vector<128x4xf32>
    %41 = tpu.matmul %38, %40, %cst_29 {dimension_numbers = #tpu.dot_dimension_numbers<[1], [0], [0], [1], [0, 0, 1, 1], [], []>} : vector<128x6xbf16>, vector<6x4xbf16>, vector<128x4xf32> -> vector<128x4xf32>
    %42 = arith.addf %37, %41 : vector<128x4xf32>
    %43 = vector.extract_strided_slice %31 {offsets = [32, 0], sizes = [128, 6], strides = [1, 1]} : vector<160x6xbf16> to vector<128x6xbf16>
    %c2 = arith.constant 2 : index
    %c0_30 = arith.constant 0 : index
    %c0_31 = arith.constant 0 : index
    %44 = vector.load %arg8[%c2, %c0_30, %c0_31] : memref<3x6x4xbf16, #tpu.memory_space<vmem>>, vector<1x6x4xbf16>
    %45 = vector.shape_cast %44 : vector<1x6x4xbf16> to vector<6x4xbf16>
    %cst_32 = arith.constant dense<0.000000e+00> : vector<128x4xf32>
    %46 = tpu.matmul %43, %45, %cst_32 {dimension_numbers = #tpu.dot_dimension_numbers<[1], [0], [0], [1], [0, 0, 1, 1], [], []>} : vector<128x6xbf16>, vector<6x4xbf16>, vector<128x4xf32> -> vector<128x4xf32>
    %47 = arith.addf %42, %46 : vector<128x4xf32>
    %c0_33 = arith.constant 0 : index
    %c0_34 = arith.constant 0 : index
    %48 = vector.load %arg9[%c0_33, %c0_34] : memref<1x4xf32, #tpu.memory_space<vmem>>, vector<1x4xf32>
    %49 = vector.broadcast %48 : vector<1x4xf32> to vector<128x4xf32>
    %50 = arith.mulf %47, %49 : vector<128x4xf32>
    %c0_35 = arith.constant 0 : index
    %c0_36 = arith.constant 0 : index
    %51 = vector.load %arg10[%c0_35, %c0_36] : memref<1x4xf32, #tpu.memory_space<vmem>>, vector<1x4xf32>
    %52 = vector.broadcast %51 : vector<1x4xf32> to vector<128x4xf32>
    %53 = arith.addf %50, %52 : vector<128x4xf32>
    %cst_37 = arith.constant 0.000000e+00 : f32
    %54 = vector.broadcast %cst_37 : f32 to vector<128x4xf32>
    %55 = arith.cmpf ogt, %53, %54 : vector<128x4xf32>
    %cst_38 = arith.constant 0.00999999977 : f32
    %56 = vector.broadcast %cst_38 : f32 to vector<128x4xf32>
    %57 = arith.mulf %56, %53 : vector<128x4xf32>
    %58 = arith.select %55, %53, %57 : vector<128x4xi1>, vector<128x4xf32>
    %59 = arith.extf %3 : vector<128x4xbf16> to vector<128x4xf32>
    %60 = arith.addf %58, %59 : vector<128x4xf32>
    %c0_39 = arith.constant 0 : index
    %c0_40 = arith.constant 0 : index
    %c0_41 = arith.constant 0 : index
    %61 = vector.load %arg11[%c0_39, %c0_40, %c0_41] : memref<1x128x4xf32, #tpu.memory_space<vmem>>, vector<1x128x4xf32>
    %62 = vector.shape_cast %61 : vector<1x128x4xf32> to vector<128x4xf32>
    %63 = vector.shape_cast %60 : vector<128x4xf32> to vector<1x128x4xf32>
    tpu.vector_store %arg11[%c0_39, %c0_40, %c0_41], %63 {strides = array<i32>} : memref<1x128x4xf32, #tpu.memory_space<vmem>>, vector<1x128x4xf32>,
    return
  }
  func.func @transform_0(%arg0: i32, %arg1: i32) -> (i32, i32, i32) {
    %c0_i32 = arith.constant 0 : i32
    %c0_i32_0 = arith.constant 0 : i32
    return %arg0, %arg1, %c0_i32 : i32, i32, i32
  }
  func.func @transform_1(%arg0: i32, %arg1: i32) -> (i32, i32, i32) {
    %c8_i32 = arith.constant 8 : i32
    %0 = arith.muli %arg1, %c8_i32 : i32
    %c1_i32 = arith.constant 1 : i32
    %1 = arith.subi %0, %c1_i32 : i32
    %c0_i32 = arith.constant 0 : i32
    %2 = arith.maxsi %1, %c0_i32 : i32
    %c0_i32_0 = arith.constant 0 : i32
    %c0_i32_1 = arith.constant 0 : i32
    return %arg0, %2, %c0_i32_0 : i32, i32, i32
  }
  func.func @transform_2(%arg0: i32, %arg1: i32) -> (i32, i32, i32) {
    %c1_i32 = arith.constant 1 : i32
    %0 = arith.addi %arg1, %c1_i32 : i32
    %c8_i32 = arith.constant 8 : i32
    %1 = arith.muli %0, %c8_i32 : i32
    %c15_i32 = arith.constant 15 : i32
    %2 = arith.minsi %1, %c15_i32 : i32
    %c0_i32 = arith.constant 0 : i32
    %c0_i32_0 = arith.constant 0 : i32
    return %arg0, %2, %c0_i32 : i32, i32, i32
  }
  func.func @transform_3(%arg0: i32, %arg1: i32) -> (i32, i32) {
    %c0_i32 = arith.constant 0 : i32
    %c0_i32_0 = arith.constant 0 : i32
    %c0_i32_1 = arith.constant 0 : i32
    return %c0_i32, %c0_i32_0 : i32, i32
  }
  func.func @transform_4(%arg0: i32, %arg1: i32) -> (i32, i32) {
    %c0_i32 = arith.constant 0 : i32
    %c0_i32_0 = arith.constant 0 : i32
    %c0_i32_1 = arith.constant 0 : i32
    return %c0_i32, %c0_i32_0 : i32, i32
  }
  func.func @transform_5(%arg0: i32, %arg1: i32) -> (i32, i32) {
    %c0_i32 = arith.constant 0 : i32
    %c0_i32_0 = arith.constant 0 : i32
    %c0_i32_1 = arith.constant 0 : i32
    return %c0_i32, %c0_i32_0 : i32, i32
  }
  func.func @transform_6(%arg0: i32, %arg1: i32) -> (i32, i32, i32) {
    %c0_i32 = arith.constant 0 : i32
    %c0_i32_0 = arith.constant 0 : i32
    %c0_i32_1 = arith.constant 0 : i32
    %c0_i32_2 = arith.constant 0 : i32
    return %c0_i32, %c0_i32_0, %c0_i32_1 : i32, i32, i32
  }
  func.func @transform_7(%arg0: i32, %arg1: i32) -> (i32, i32) {
    %c0_i32 = arith.constant 0 : i32
    %c0_i32_0 = arith.constant 0 : i32
    %c0_i32_1 = arith.constant 0 : i32
    return %c0_i32, %c0_i32_0 : i32, i32
  }
  func.func @transform_8(%arg0: i32, %arg1: i32) -> (i32, i32) {
    %c0_i32 = arith.constant 0 : i32
    %c0_i32_0 = arith.constant 0 : i32
    %c0_i32_1 = arith.constant 0 : i32
    return %c0_i32, %c0_i32_0 : i32, i32
  }
  func.func @transform_9(%arg0: i32, %arg1: i32) -> (i32, i32, i32) {
    %c0_i32 = arith.constant 0 : i32
    %c0_i32_0 = arith.constant 0 : i32
    return %arg0, %arg1, %c0_i32 : i32, i32, i32
  }
}

</mosaic_0001>

<bundles_post_ra>
// kernel: residual_forward.1
= control target key start
LH: loop header
LB: loop body
LE: loop exit
PB: predicated region body
PF: predicated region fallthrough
CT: control target
= control target key end

     0   :  { %s2768_s30 = smov 0   ;;  %s2770_s10 = smov 0   ;;  %s3414_s0 = inlined_call_operand.vmem [shape: bf16[2,256,4], index: 0, kind: input, shape index: {}, may-alias: {0,1,2}]   ;;  %s3415_s1 = inlined_call_operand.vmem [shape: bf16[2,256,4], index: 1, kind: input, shape index: {}, may-alias: {0,1,2}]   ;;  %s3416_s2 = inlined_call_operand.vmem [shape: bf16[2,256,4], index: 2, kind: input, shape index: {}, may-alias: {0,1,2}]   ;;  %s3417_s3 = inlined_call_operand.vmem [shape: bf16[4,2], index: 3, kind: input, shape index: {}]   ;;  %s3418_s4 = inlined_call_operand.vmem [shape: f32[1,2], index: 4, kind: input, shape index: {}]   ;;  %s3419_s5 = inlined_call_operand.vmem [shape: f32[1,2], index: 5, kind: input, shape index: {}]   ;;  %s3420_s6 = inlined_call_operand.vmem [shape: bf16[3,6,4], index: 6, kind: input, shape index: {}]   ;;  %s3421_s7 = inlined_call_operand.vmem [shape: f32[1,4], index: 7, kind: input, shape index: {}]   ;;  %s3422_s8 = inlined_call_operand.vmem [shape: f32[1,4], index: 8, kind: input, shape index: {}]   ;;  %s3423_s9 = inlined_call_operand.vmem [shape: f32[2,256,4], index: 9, kind: output, shape index: {}]  }
   0x1   :  { %s2772_s11 = smov 0   ;;  %s2774_s12 = smov 0  }
   0x2   :  { %s2776_s13 = smov 0  }
   0x3 LB: > { %s28_s14 = sadd.s32 1, %s2701_s11  ;;  %s31_s15 = sadd.s32 1, %s2705_s12  ;;  %s2709_s13 = sphi %s2776_s13, %s19_s13   ;;  %s2705_s12 = sphi %s2774_s12, %s3434_s12   ;;  %s2701_s11 = sphi %s2772_s11, %s3433_s11   ;;  %s2697_s10 = sphi %s2770_s10, %s3432_s10   ;;  %s2693_s30 = sphi %s2768_s30, %s3431_s30  }
   0x4   : > { %p29_p0 = scmp.ge.s32.totalorder %s28_s14, 2  ;;  %p2280_p1 = scmp.ge.s32.totalorder %s2709_s13, 1 }
   0x5   : > { %p374_p2 = scmp.lt.s32.totalorder %s2709_s13, 5 }
   0x6   : > { %s3436_s14 = smov (%p29_p0, %s28_s14), 0  ;;  %s3438_s15 = smov (!%p29_p0, %s31_s15), %s2705_s12 }
   0x7   : > { %p375_p3 = pnand %p2280_p1, %p374_p2  ;;  %p33_p4 = scmp.ge.s32.totalorder %s3438_s15, 2 }
   0x8   : > { %v549_v0 = vld [vmem:[%s3417_s3] sm:$0x3] (!%p375_p3)  ;;  %vm615_vm0 = vcmask (!%p375_p3), 1041408   ;;  %s2281_s18 = sshll.u32 (!%p375_p3), %s2693_s30, 4  ;;  %p445_p5 = scmp.lt.s32.totalorder (!%p375_p3), %s2697_s10, 1  ;;  %vm501_vm1 = vcmask (!%p375_p3), 11264  }
   0x9   : > { %s3440_s15 = smov (%p33_p4, %s3438_s15), 0  ;;  %378 = sbr.rel (%p375_p3) target bundleno = 1161 (0x489), region = 56 }
   0xa   : > { %2580 = vmatprep.subr.msk.bf16.mxu0 (!%p375_p3), %vm615_vm0, %v549_v0  ;;  %2581 = vmatprep.subr.msk.bf16.mxu1 (!%p375_p3), %vm615_vm0, %v549_v0  ;;  %v617_v1 = vsel (!%p375_p3), %vm615_vm0, %v549_v0, 0  ;;  %p2809_p6 = scmp.lt.s32.totalorder (!%p375_p3), %s2281_s18, 31  ;;  %s2284_s20 = sshll.u32 (!%p375_p3), %s2693_s30, 3  ;;  %v2711_v2 = vmov (!%p375_p3), 0   ;;  %vm590_vm2 = vcmask (!%p375_p3), 31744   ;;  %vm504_vm3 = vcmask (!%p375_p3), 8192  }
   0xb   : > { %2461 = vmatpush3.bf16.msra.mxu0 (!%p375_p3), %v617_v1  ;;  %2545 = vmatpush3.bf16.msra.mxu1 (!%p375_p3), %v617_v1  ;;  %502 = vst.msk [vmem:[#allocation2] sm:$0xf] (!%p375_p3), %vm501_vm1, %v2711_v2  ;;  %503 = vst.msk [vmem:[#allocation2 + $0x4] sm:$0xf] (!%p375_p3), %vm501_vm1, %v2711_v2  ;;  %s2285_s22 = sadd.s32 (!%p375_p3), 4294967295, %s2284_s20  ;;  %s2399_s25 = sadd.s32 (!%p375_p3), 8, %s2284_s20 }
   0xc   : > { %509 = vst.msk [vmem:[#allocation2 + $0x18] sm:$0xf] (!%p375_p3), %vm501_vm1, %v2711_v2  ;;  %530 = vst.msk [vmem:[#allocation2 + $0x6c] sm:$0xf] (!%p375_p3), %vm501_vm1, %v2711_v2  ;;  %p456_p7 = scmp.gt.s32.totalorder (!%p375_p3), %s2285_s22, 0  ;;  %p474_p8 = scmp.lt.s32.totalorder (!%p375_p3), %s2399_s25, 15 }
   0xd   : > { %531 = vst.msk [vmem:[#allocation2 + $0x70] sm:$0xf] (!%p375_p3), %vm501_vm1, %v2711_v2  ;;  %506 = vst.msk [vmem:[#allocation2 + $0xc] sm:$0xf] (!%p375_p3), %vm501_vm1, %v2711_v2  ;;  %v2942_v11 = vld [vmem:[%s3418_s4] ss:$0 sm:$0xff] (!%p375_p3) }
   0xe   : > { %507 = vst.msk [vmem:[#allocation2 + $0x10] sm:$0xf] (!%p375_p3), %vm501_vm1, %v2711_v2  ;;  %510 = vst.msk [vmem:[#allocation2 + $0x1c] sm:$0xf] (!%p375_p3), %vm501_vm1, %v2711_v2  ;;  %v2947_v13 = vld [vmem:[%s3419_s5] ss:$0 sm:$0xff] (!%p375_p3) }
   0xf   : > { %512 = vst.msk [vmem:[#allocation2 + $0x24] sm:$0xf] (!%p375_p3), %vm501_vm1, %v2711_v2  ;;  %513 = vst.msk [vmem:[#allocation2 + $0x28] sm:$0xf] (!%p375_p3), %vm501_vm1, %v2711_v2  ;;  %vm1023_vm4 = vsmask.f32 (!%p375_p3), 7938 }
  0x10   : > { %s3442_s10 = smov (!%p445_p5, %s2697_s10), 1  ;;  %515 = vst.msk [vmem:[#allocation2 + $0x30] sm:$0xf] %vm501_vm1, %v2711_v2  ;;  %516 = vst.msk [vmem:[#allocation2 + $0x34] sm:$0xf] %vm501_vm1, %v2711_v2  ;;  %s3444_s18 = smov (!%p2809_p6, %s2281_s18), 31 }
  0x11   : > { %518 = vst.msk [vmem:[#allocation2 + $0x3c] sm:$0xf] %vm501_vm1, %v2711_v2  ;;  %519 = vst.msk [vmem:[#allocation2 + $0x40] sm:$0xf] %vm501_vm1, %v2711_v2  ;;  %s2858_s21 = sshll.u32 %s3442_s10, 5  ;;  %s3446_s22 = smov (!%p456_p7, %s2285_s22), 0 }
  0x12   : > { %521 = vst.msk [vmem:[#allocation2 + $0x48] sm:$0xf] %vm501_vm1, %v2711_v2  ;;  %522 = vst.msk [vmem:[#allocation2 + $0x4c] sm:$0xf] %vm501_vm1, %v2711_v2  ;;  %s450_s23 = sadd.s32 %s2858_s21, %s3444_s18  ;;  %s3448_s25 = smov (!%p474_p8, %s2399_s25), 15 }
  0x13   : > { %524 = vst.msk [vmem:[#allocation2 + $0x54] sm:$0xf] %vm501_vm1, %v2711_v2  ;;  %525 = vst.msk [vmem:[#allocation2 + $0x58] sm:$0xf] %vm501_vm1, %v2711_v2  ;;  %s2283_s24 = sshll.u32 %s450_s23, 2  ;;  %s2286_s29 = sshll.u32 %s3446_s22, 1 }
  0x14   : > { %527 = vst.msk [vmem:[#allocation2 + $0x60] sm:$0xf] %vm501_vm1, %v2711_v2  ;;  %528 = vst.msk [vmem:[#allocation2 + $0x64] sm:$0xf] %vm501_vm1, %v2711_v2  ;;  %s452_s28 = scalar_lea.vmem %s3414_s0, %s2283_s24  ;;  %s2295_s10 = sshll.u32 %s450_s23, 3 }
  0x15   : > { %v2868_v3 = vld [vmem:[%s452_s28] sm:$0xff]   ;;  %v2872_v5 = vld [vmem:[%s452_s28 + $0x8] sm:$0xff]   ;;  %v2876_v7 = vld [vmem:[%s452_s28 + $0x10] sm:$0xff]   ;;  %p461_p9 = scmp.lt.s32.totalorder %s2286_s29, 31  ;;  %s2290_s16 = sshll.u32 %s3448_s25, 1 }
  0x16   : > { %v2870_v4 = vld [vmem:[%s452_s28 + $0x20] sm:$0xff]   ;;  %v2874_v6 = vld [vmem:[%s452_s28 + $0x28] sm:$0xff]   ;;  %v2878_v8 = vld [vmem:[%s452_s28 + $0x30] sm:$0xff]   ;;  %2462 = vmatprep.mubr.msk.bf16.mxu0 %vm590_vm2, %v2868_v3  ;;  %p479_p10 = scmp.lt.s32.totalorder %s2290_s16, 31  ;;  %s2887_s19 = scalar_lea.vmem %s3423_s9, %s2295_s10  ;;  %505 = vst.msk [vmem:[#allocation2 + $0x8] sm:$0x1] %vm504_vm3, %v2711_v2 }
  0x17   : > { %2470 = vmatprep.mubr.msk.bf16.mxu1 %vm590_vm2, %v2870_v4  ;;  %2463 = vmatmul.mubr.msk.bf16.vlgmr.msra.gmra.mrb[0].mxu0 %vm590_vm2, %v2872_v5  ;;  %s3450_s29 = smov (!%p461_p9, %s2286_s29), 31  ;;  %v2897_v9 = vld [vmem:[%s452_s28 + $0x18] sm:$0xff]   ;;  %511 = vst.msk [vmem:[#allocation2 + $0x20] sm:$0x1] %vm504_vm3, %v2711_v2  ;;  %532 = vst.msk [vmem:[#allocation2 + $0x74] sm:$0x1] %vm504_vm3, %v2711_v2 }
  0x18   : > { %2471 = vmatmul.mubr.msk.bf16.vlgmr.msra.gmra.mrb[0].mxu1 %vm590_vm2, %v2874_v6  ;;  %2466 = vmatprep.mubr.msk.bf16.mxu0 %vm590_vm2, %v2876_v7  ;;  %v2899_v10 = vld [vmem:[%s452_s28 + $0x38] sm:$0xff]   ;;  %s3452_s16 = smov (!%p479_p10, %s2290_s16), 31  ;;  %s464_s20 = sadd.s32 %s2858_s21, %s3450_s29  ;;  %508 = vst.msk [vmem:[#allocation2 + $0x14] sm:$0x1] %vm504_vm3, %v2711_v2  ;;  %514 = vst.msk [vmem:[#allocation2 + $0x2c] sm:$0x1] %vm504_vm3, %v2711_v2 }
  0x19   : > { %2474 = vmatprep.mubr.msk.bf16.mxu1 %vm590_vm2, %v2878_v8  ;;  %s2902_s22 = sshll.u32 %s464_s20, 2  ;;  %s482_s23 = sadd.s32 %s2858_s21, %s3452_s16  ;;  %517 = vst.msk [vmem:[#allocation2 + $0x38] sm:$0x1] %vm504_vm3, %v2711_v2  ;;  %520 = vst.msk [vmem:[#allocation2 + $0x44] sm:$0x1] %vm504_vm3, %v2711_v2 }
  0x1a   : > { %s466_s26 = scalar_lea.vmem %s3415_s1, %s2902_s22  ;;  %s2909_s27 = sshll.u32 %s482_s23, 2  ;;  %523 = vst.msk [vmem:[#allocation2 + $0x50] sm:$0x1] %vm504_vm3, %v2711_v2  ;;  %526 = vst.msk [vmem:[#allocation2 + $0x5c] sm:$0x1] %vm504_vm3, %v2711_v2 }
  0x1b   : > { %s484_s18 = scalar_lea.vmem %s3416_s2, %s2909_s27  ;;  %529 = vst.msk [vmem:[#allocation2 + $0x68] sm:$0x1] %vm504_vm3, %v2711_v2  ;;  %vm858_vm9 = vsmask.f32 256  ;;  %vm859_vm10 = vsmask.f32 4368  ;;  %vm2980_vm12 = vmand %vm501_vm1, %vm1023_vm4 }
  0x1c   : > { %v1034_v0 = vld [vmem:[#allocation2 + $0x18] sm:$0xf]  ;;  %vm3005_vm14 = vmor %vm858_vm9, %vm859_vm10  ;;  %p2330_p11 = scmp.le.s32.totalorder %s2693_s30, 0 }
  0x1d   : > { %vm3013_vm15 = vmand %vm504_vm3, %vm858_vm9 }
  0x1f   : > { %2467 = vmatmul.mubr.msk.bf16.gmra.mrb[4].mxu0 %vm590_vm2, %v2897_v9 }
  0x20   : > { %2475 = vmatmul.mubr.msk.bf16.gmra.mrb[4].mxu1 %vm590_vm2, %v2899_v10 }
  0xea   : > { %v2464_v12 = vpop.f32.mrb[0].mxu0 }
  0xeb   : > { %v2472_v14 = vpop.f32.mrb[0].mxu1  ;;  %v725_v15 = vmul.f32 %v2464_v12, %v2942_v11  ;;  %v653_v17 = vpop.f32.mrb[1].mxu0 }
  0xec   : > { %v733_v16 = vmul.f32 %v2472_v14, %v2942_v11  ;;  %v685_v18 = vpop.f32.mrb[1].mxu1  ;;  %v723_v19 = vmul.f32 %v2942_v11, %v653_v17  ;;  %v2465_v21 = vpop.f32.mrb[2].mxu0 }
  0xed   : > { %v731_v20 = vmul.f32 %v2942_v11, %v685_v18  ;;  %v2473_v22 = vpop.f32.mrb[2].mxu1  ;;  %v748_v23 = vadd.f32 %v2947_v13, %v725_v15  ;;  %v726_v25 = vmul.f32 %v2465_v21, %v2942_v11  ;;  %v656_v27 = vpop.f32.mrb[3].mxu0  ;;  %v1062_v15 = vld [vmem:[#allocation2 + $0x48] sm:$0xf] }
  0xee   : > { %v756_v24 = vadd.f32 %v2947_v13, %v733_v16  ;;  %v734_v26 = vmul.f32 %v2473_v22, %v2942_v11  ;;  %v688_v28 = vpop.f32.mrb[3].mxu1  ;;  %v746_v29 = vadd.f32 %v2947_v13, %v723_v19  ;;  %v2960_v31 = vmul.f32 %v2942_v11, %v656_v27 }
  0xef   : > { %v754_v30 = vadd.f32 %v2947_v13, %v731_v20  ;;  %vm764_vm5 = vcmp.gt.f32.partialorder %v748_v23, 0.0  ;;  %v780_v32 = vmul.f32 0.01, %v748_v23  ;;  %v749_v38 = vadd.f32 %v2947_v13, %v726_v25 }
  0xf0   : > { %vm772_vm6 = vcmp.gt.f32.partialorder %v756_v24, 0.0  ;;  %v788_v33 = vmul.f32 0.01, %v756_v24  ;;  %vm762_vm7 = vcmp.gt.f32.partialorder %v746_v29, 0.0  ;;  %v778_v34 = vmul.f32 0.01, %v746_v29 }
  0xf1   : > { %vm770_vm8 = vcmp.gt.f32.partialorder %v754_v30, 0.0  ;;  %v786_v35 = vmul.f32 0.01, %v754_v30  ;;  %v796_v36 = vsel %vm764_vm5, %v748_v23, %v780_v32  ;;  %v757_v39 = vadd.f32 %v2947_v13, %v734_v26  ;;  %v1025_v23 = vld [vmem:[#allocation2 + $0xc] sm:$0xf] }
  0xf2   : > { %v804_v37 = vsel %vm772_vm6, %v756_v24, %v788_v33  ;;  %v2402_v40 = vpack.c.bf16 %v796_v36, %v796_v36  ;;  %v794_v42 = vsel %vm762_vm7, %v746_v29, %v778_v34  ;;  %v2468_v44 = vpop.f32.mrb[4].mxu0  ;;  %vm765_vm11 = vcmp.gt.f32.partialorder %v749_v38, 0.0  ;;  %v1055_v24 = vld [vmem:[#allocation2 + $0x3c] sm:$0xf] }
  0xf3   : > { %v2410_v41 = vpack.c.bf16 %v804_v37, %v804_v37  ;;  %v802_v43 = vsel %vm770_vm8, %v754_v30, %v786_v35  ;;  %v2476_v45 = vpop.f32.mrb[4].mxu1  ;;  %v2400_v46 = vpack.c.bf16 %v794_v42, %v794_v42  ;;  %v781_v48 = vmul.f32 0.01, %v749_v38  ;;  %v669_v49 = vpop.f32.mrb[5].mxu0 }
  0xf4   : > { %v2408_v47 = vpack.c.bf16 %v802_v43, %v802_v43  ;;  %v2964_v50 = vpop.f32.mrb[5].mxu1  ;;  %v879_v51 = vshrl.u32 %v2402_v40, 16  ;;  %v882_v52 = vshll.u32 %v2402_v40, 16  ;;  %v732_v54 = vmul.f32 %v2942_v11, %v688_v28  ;;  %v2967_v55 = vpop.f32.mrb[6].mxu0 }
  0xf5   : > { %v947_v53 = vshrl.u32 %v2410_v41, 16  ;;  %v2969_v56 = vpop.f32.mrb[6].mxu1  ;;  %v950_v57 = vshll.u32 %v2410_v41, 16  ;;  %v862_v58 = vshrl.u32 %v2400_v46, 16  ;;  %v865_v59 = vshll.u32 %v2400_v46, 16  ;;  %v2971_v61 = vpop.f32.mrb[7].mxu0 }
  0xf6   : > { %v930_v60 = vshrl.u32 %v2408_v47, 16  ;;  %v2973_v62 = vpop.f32.mrb[7].mxu1  ;;  %v881_v63 = vrot.slane %v879_v51, 7  ;;  %v933_v2 = vshll.u32 %v2408_v47, 16  ;;  %v797_v12 = vsel %vm765_vm11, %v749_v38, %v781_v48 }
  0xf7   : > { %v2975_v1 = vrot.slane %v947_v53, 7  ;;  %v2984_v16 = vrot.slane %v862_v58, 7  ;;  %v2403_v18 = vpack.c.bf16 %v797_v12, %v797_v12  ;;  %v789_v19 = vmul.f32 0.01, %v757_v39 }
  0xf8   : > { %v2986_v17 = vrot.slane %v930_v60, 7  ;;  %v884_v20 = vor.u32 %v882_v52, %v881_v63  ;;  %v885_v21 = vrot.slane %v881_v63, 4  ;;  %vm773_vm13 = vcmp.gt.f32.partialorder %v757_v39, 0.0 }
  0xf9   : > { %v952_v22 = vor.u32 %v950_v57, %v2975_v1  ;;  %v953_v25 = vrot.slane %v2975_v1, 4  ;;  %v867_v26 = vor.u32 %v865_v59, %v2984_v16  ;;  %v868_v27 = vrot.slane %v2984_v16, 4  ;;  %v1048_v16 = vld [vmem:[#allocation2 + $0x30] sm:$0xf] }
  0xfa   : > { %v935_v28 = vor.u32 %v933_v2, %v2986_v17  ;;  %v1035_v29 = vsel %vm2980_vm12, %v884_v20, %v1034_v0  ;;  %v887_v32 = vshrl.u32 %v2403_v18, 16  ;;  %v890_v33 = vshll.u32 %v2403_v18, 16 }
  0xfb   : > { %v1063_v30 = vsel %vm2980_vm12, %v952_v22, %v1062_v15  ;;  %1036 = vst [vmem:[#allocation2 + $0x18] sm:$0xf] %v1035_v29  ;;  %v1026_v34 = vsel %vm2980_vm12, %v867_v26, %v1025_v23  ;;  %v805_v36 = vsel %vm773_vm13, %v757_v39, %v789_v19  ;;  %v747_v37 = vadd.f32 %v2947_v13, %v2960_v31  ;;  %v1038_v31 = vld [vmem:[#allocation2 + $0x20] sm:$0x1]  ;;  %v1031_v29 = vld [vmem:[#allocation2 + $0x14] sm:$0x1] }
  0xfc   : > { %1064 = vst [vmem:[#allocation2 + $0x48] sm:$0xf] %v1063_v30  ;;  %v1056_v35 = vsel %vm2980_vm12, %v935_v28, %v1055_v24  ;;  %1027 = vst [vmem:[#allocation2 + $0xc] sm:$0xf] %v1026_v34  ;;  %v889_v40 = vrot.slane %v887_v32, 7  ;;  %v2411_v41 = vpack.c.bf16 %v805_v36, %v805_v36  ;;  %v755_v42 = vadd.f32 %v2947_v13, %v732_v54 }
  0xfd   : > { %1057 = vst [vmem:[#allocation2 + $0x3c] sm:$0xf] %v1056_v35  ;;  %v729_v43 = vmul.f32 %v2468_v44, %v2942_v11  ;;  %vm763_vm4 = vcmp.gt.f32.partialorder %v747_v37, 0.0  ;;  %v779_v46 = vmul.f32 0.01, %v747_v37  ;;  %v737_v47 = vmul.f32 %v2476_v45, %v2942_v11 }
  0xfe   : > { %v727_v48 = vmul.f32 %v2942_v11, %v669_v49  ;;  %v892_v51 = vor.u32 %v890_v33, %v889_v40  ;;  %v894_v52 = vrot.slane %v889_v40, 4  ;;  %v955_v53 = vshrl.u32 %v2411_v41, 16  ;;  %v1066_v45 = vld [vmem:[#allocation2 + $0x50] sm:$0x1] }
  0xff   : > { %v958_v57 = vshll.u32 %v2411_v41, 16  ;;  %v795_v54 = vsel %vm763_vm4, %v747_v37, %v779_v46  ;;  %vm771_vm5 = vcmp.gt.f32.partialorder %v755_v42, 0.0  ;;  %v787_v44 = vmul.f32 0.01, %v755_v42  ;;  %v1059_v46 = vld [vmem:[#allocation2 + $0x44] sm:$0x1] }
 0x100   : > { %v752_v58 = vadd.f32 %v2947_v13, %v729_v43  ;;  %v893_v59 = vsel %vm3005_vm14, %v885_v21, %v892_v51  ;;  %v1039_v60 = vsel %vm3013_vm15, %v894_v52, %v1038_v31  ;;  %v957_v63 = vrot.slane %v955_v53, 7 }
 0x101   : > { %v2401_v0 = vpack.c.bf16 %v795_v54, %v795_v54  ;;  %1037 = vst.msk [vmem:[#allocation2 + $0x1c] sm:$0xf] %vm501_vm1, %v893_v59  ;;  %1040 = vst [vmem:[#allocation2 + $0x20] sm:$0x1] %v1039_v60  ;;  %v803_v49 = vsel %vm771_vm5, %v755_v42, %v787_v44  ;;  %v760_v2 = vadd.f32 %v2947_v13, %v737_v47  ;;  %v936_v51 = vrot.slane %v2986_v17, 4 }
 0x102   : > { %vm768_vm3 = vcmp.gt.f32.partialorder %v752_v58, 0.0  ;;  %v784_v1 = vmul.f32 0.01, %v752_v58  ;;  %v960_v12 = vor.u32 %v958_v57, %v957_v63  ;;  %v962_v15 = vrot.slane %v957_v63, 4 }
 0x103   : > { %v870_v18 = vshrl.u32 %v2401_v0, 16  ;;  %v873_v19 = vshll.u32 %v2401_v0, 16  ;;  %v2409_v20 = vpack.c.bf16 %v803_v49, %v803_v49  ;;  %vm776_vm6 = vcmp.gt.f32.partialorder %v760_v2, 0.0  ;;  %v1076_v0 = vld [vmem:[#allocation2 + $0x60] sm:$0xf] }
 0x104   : > { %v800_v21 = vsel %vm768_vm3, %v752_v58, %v784_v1  ;;  %v792_v22 = vmul.f32 0.01, %v760_v2  ;;  %v961_v23 = vsel %vm3005_vm14, %v953_v25, %v960_v12  ;;  %v1067_v24 = vsel %vm3013_vm15, %v962_v15, %v1066_v45 }
 0x105   : > { %v872_v26 = vrot.slane %v870_v18, 7  ;;  %v2406_v28 = vpack.c.bf16 %v800_v21, %v800_v21  ;;  %1065 = vst.msk [vmem:[#allocation2 + $0x4c] sm:$0xf] %vm501_vm1, %v961_v23  ;;  %1068 = vst [vmem:[#allocation2 + $0x50] sm:$0x1] %v1067_v24  ;;  %v938_v30 = vshrl.u32 %v2409_v20, 16  ;;  %v750_v34 = vadd.f32 %v2947_v13, %v727_v48 }
 0x106   : > { %v941_v32 = vshll.u32 %v2409_v20, 16  ;;  %v808_v33 = vsel %vm776_vm6, %v760_v2, %v792_v22  ;;  %v735_v48 = vmul.f32 %v2942_v11, %v2964_v50  ;;  %v730_v49 = vmul.f32 %v2967_v55, %v2942_v11  ;;  %v1041_v24 = vld [vmem:[#allocation2 + $0x24] sm:$0xf] }
 0x107   : > { %v875_v35 = vor.u32 %v873_v19, %v872_v26  ;;  %v877_v36 = vrot.slane %v872_v26, 4  ;;  %v913_v37 = vshrl.u32 %v2406_v28, 16  ;;  %v916_v40 = vshll.u32 %v2406_v28, 16 }
 0x108   : > { %v940_v41 = vrot.slane %v938_v30, 7  ;;  %v2414_v25 = vpack.c.bf16 %v808_v33, %v808_v33  ;;  %vm766_vm7 = vcmp.gt.f32.partialorder %v750_v34, 0.0  ;;  %v782_v42 = vmul.f32 0.01, %v750_v34 }
 0x109   : > { %v876_v43 = vsel %vm3005_vm14, %v868_v27, %v875_v35  ;;  %v1032_v31 = vsel %vm3013_vm15, %v877_v36, %v1031_v29  ;;  %v3038_v47 = vrot.slane %v913_v37, 7  ;;  %v758_v58 = vadd.f32 %v2947_v13, %v735_v48  ;;  %v1069_v36 = vld [vmem:[#allocation2 + $0x54] sm:$0xf] }
 0x10a   : > { %1028 = vst.msk [vmem:[#allocation2 + $0x10] sm:$0xf] %vm501_vm1, %v876_v43  ;;  %1033 = vst [vmem:[#allocation2 + $0x14] sm:$0x1] %v1032_v31  ;;  %v943_v52 = vor.u32 %v941_v32, %v940_v41  ;;  %v945_v53 = vrot.slane %v940_v41, 4  ;;  %v981_v57 = vshrl.u32 %v2414_v25, 16  ;;  %v798_v44 = vsel %vm766_vm7, %v750_v34, %v782_v42 }
 0x10b   : > { %v918_v27 = vor.u32 %v916_v40, %v3038_v47  ;;  %v984_v54 = vshll.u32 %v2414_v25, 16  ;;  %v2404_v60 = vpack.c.bf16 %v798_v44, %v798_v44  ;;  %vm774_vm8 = vcmp.gt.f32.partialorder %v758_v58, 0.0 }
 0x10c   : > { %v944_v59 = vsel %vm3005_vm14, %v936_v51, %v943_v52  ;;  %v1060_v50 = vsel %vm3013_vm15, %v945_v53, %v1059_v46  ;;  %v3051_v17 = vrot.slane %v981_v57, 7  ;;  %v790_v45 = vmul.f32 0.01, %v758_v58  ;;  %v1052_v53 = vld [vmem:[#allocation2 + $0x38] sm:$0x1] }
 0x10d   : > { %1058 = vst.msk [vmem:[#allocation2 + $0x40] sm:$0xf] %vm501_vm1, %v944_v59  ;;  %1061 = vst [vmem:[#allocation2 + $0x44] sm:$0x1] %v1060_v50  ;;  %v1049_v63 = vsel %vm2980_vm12, %v918_v27, %v1048_v16  ;;  %v896_v2 = vshrl.u32 %v2404_v60, 16  ;;  %v899_v12 = vshll.u32 %v2404_v60, 16  ;;  %v753_v18 = vadd.f32 %v2947_v13, %v730_v49 }
 0x10e   : > { %1050 = vst [vmem:[#allocation2 + $0x30] sm:$0xf] %v1049_v63  ;;  %v986_v1 = vor.u32 %v984_v54, %v3051_v17  ;;  %v806_v15 = vsel %vm774_vm8, %v758_v58, %v790_v45  ;;  %v738_v19 = vmul.f32 %v2969_v56, %v2942_v11  ;;  %v728_v20 = vmul.f32 %v2942_v11, %v2971_v61 }
 0x10f   : > { %v3066_v22 = vrot.slane %v896_v2, 7  ;;  %v2412_v55 = vpack.c.bf16 %v806_v15, %v806_v15  ;;  %v736_v23 = vmul.f32 %v2942_v11, %v2973_v62  ;;  %vm769_vm9 = vcmp.gt.f32.partialorder %v753_v18, 0.0 }
 0x110   : > { %v1077_v21 = vsel %vm2980_vm12, %v986_v1, %v1076_v0  ;;  %v785_v26 = vmul.f32 0.01, %v753_v18  ;;  %v761_v28 = vadd.f32 %v2947_v13, %v738_v19  ;;  %v751_v56 = vadd.f32 %v2947_v13, %v728_v20  ;;  %v1080_v0 = vld [vmem:[#allocation2 + $0x68] sm:$0x1] }
 0x111   : > { %1078 = vst [vmem:[#allocation2 + $0x60] sm:$0xf] %v1077_v21  ;;  %v901_v29 = vor.u32 %v899_v12, %v3066_v22  ;;  %v964_v61 = vshrl.u32 %v2412_v55, 16  ;;  %v967_v30 = vshll.u32 %v2412_v55, 16  ;;  %v759_v40 = vadd.f32 %v2947_v13, %v736_v23  ;;  %v1045_v12 = vld [vmem:[#allocation2 + $0x2c] sm:$0x1] }
 0x112   : > { %v801_v32 = vsel %vm769_vm9, %v753_v18, %v785_v26  ;;  %vm777_vm10 = vcmp.gt.f32.partialorder %v761_v28, 0.0  ;;  %v793_v33 = vmul.f32 0.01, %v761_v28  ;;  %vm767_vm11 = vcmp.gt.f32.partialorder %v751_v56, 0.0 }
 0x113   : > { %v1042_v34 = vsel %vm2980_vm12, %v901_v29, %v1041_v24  ;;  %v966_v11 = vrot.slane %v964_v61, 7  ;;  %v2407_v62 = vpack.c.bf16 %v801_v32, %v801_v32  ;;  %v783_v35 = vmul.f32 0.01, %v751_v56  ;;  %v1089_v32 = vld [vmem:[%s3417_s3] sm:$0x3] (!%p2330_p11) }
 0x114   : > { %1043 = vst [vmem:[#allocation2 + $0x24] sm:$0xf] %v1042_v34  ;;  %v809_v37 = vsel %vm777_vm10, %v761_v28, %v793_v33  ;;  %vm775_vm13 = vcmp.gt.f32.partialorder %v759_v40, 0.0  ;;  %v791_v31 = vmul.f32 0.01, %v759_v40  ;;  %v919_v27 = vrot.slane %v3038_v47, 4 }
 0x115   : > { %v969_v41 = vor.u32 %v967_v30, %v966_v11  ;;  %v921_v25 = vshrl.u32 %v2407_v62, 16  ;;  %v2415_v42 = vpack.c.bf16 %v809_v37, %v809_v37  ;;  %v799_v43 = vsel %vm767_vm11, %v751_v56, %v783_v35 }
 0x116   : > { %v924_v51 = vshll.u32 %v2407_v62, 16  ;;  %v2405_v52 = vpack.c.bf16 %v799_v43, %v799_v43  ;;  %v807_v57 = vsel %vm775_vm13, %v759_v40, %v791_v31  ;;  %v987_v1 = vrot.slane %v3051_v17, 4  ;;  %v2333_v62 = vld [vmem:[%s3418_s4] ss:$0 sm:$0xff] (!%p2330_p11) }
 0x117   : > { %v1070_v46 = vsel %vm2980_vm12, %v969_v41, %v1069_v36  ;;  %v923_v48 = vrot.slane %v921_v25, 7  ;;  %v989_v16 = vshrl.u32 %v2415_v42, 16  ;;  %v992_v59 = vshll.u32 %v2415_v42, 16  ;;  %v2334_v36 = vld [vmem:[%s3419_s5] ss:$0 sm:$0xff] (!%p2330_p11) }
 0x118   : > { %1071 = vst [vmem:[#allocation2 + $0x54] sm:$0xf] %v1070_v46  ;;  %v904_v44 = vshrl.u32 %v2405_v52, 16  ;;  %v2413_v50 = vpack.c.bf16 %v807_v57, %v807_v57  ;;  %v907_v49 = vshll.u32 %v2405_v52, 16  ;;  %v902_v18 = vrot.slane %v3066_v22, 4 }
 0x119   : > { %v926_v54 = vor.u32 %v924_v51, %v923_v48  ;;  %v928_v13 = vrot.slane %v923_v48, 4  ;;  %v991_v58 = vrot.slane %v989_v16, 7  ;;  %v1073_v22 = vld [vmem:[#allocation2 + $0x5c] sm:$0x1]  ;;  %v970_v28 = vrot.slane %v966_v11, 4  ;;  %v2649_v11 = vld [vmem:[%s466_s26] sm:$0xff] (!%p2330_p11)  }
 0x11a   : > { %v906_v45 = vrot.slane %v904_v44, 7  ;;  %v972_v15 = vshrl.u32 %v2413_v50, 16  ;;  %v975_v24 = vshll.u32 %v2413_v50, 16  ;;  %v2712_v33 = vmov (!%p2330_p11), 0.0   ;;  %v1192_v44 = vld [vmem:[#allocation2] sm:$0xf] (!%p2330_p11) }
 0x11b   : > { %v927_v60 = vsel %vm3005_vm14, %v919_v27, %v926_v54  ;;  %v1053_v63 = vsel %vm3013_vm15, %v928_v13, %v1052_v53  ;;  %v994_v47 = vor.u32 %v992_v59, %v991_v58  ;;  %v996_v2 = vrot.slane %v991_v58, 4  ;;  %1086 = sbr.rel (%p2330_p11) target bundleno = 521 (0x209), region = 60  ;;  %2478 = vmatprep.subr.bf16.mxu0 (!%p2330_p11), %v2712_v33 }
 0x11c   : > { %1051 = vst.msk [vmem:[#allocation2 + $0x34] sm:$0xf] %vm501_vm1, %v927_v60  ;;  %1054 = vst [vmem:[#allocation2 + $0x38] sm:$0x1] %v1053_v63  ;;  %v909_v19 = vor.u32 %v907_v49, %v906_v45  ;;  %v911_v20 = vrot.slane %v906_v45, 4  ;;  %v974_v23 = vrot.slane %v972_v15, 7 }
 0x11d   : > { %v995_v21 = vsel %vm3005_vm14, %v987_v1, %v994_v47  ;;  %v1081_v55 = vsel %vm3013_vm15, %v996_v2, %v1080_v0  ;;  %v1099_v34 = vsel (!%p2330_p11), %vm615_vm0, %v1089_v32, 0  ;;  %vm2713_vm4 = vmmov (!%p2330_p11), 0   ;;  %v1196_v60 = vld [vmem:[#allocation2 + $0x8] sm:$0x1] (!%p2330_p11) }
 0x11e   : > { %1079 = vst.msk [vmem:[#allocation2 + $0x64] sm:$0xf] %vm501_vm1, %v995_v21  ;;  %1082 = vst [vmem:[#allocation2 + $0x68] sm:$0x1] %v1081_v55  ;;  %v910_v17 = vsel %vm3005_vm14, %v902_v18, %v909_v19  ;;  %v1046_v26 = vsel %vm3013_vm15, %v911_v20, %v1045_v12  ;;  %v977_v56 = vor.u32 %v975_v24, %v974_v23  ;;  %v979_v29 = vrot.slane %v974_v23, 4 }
 0x11f   : > { %1044 = vst.msk [vmem:[#allocation2 + $0x28] sm:$0xf] %vm501_vm1, %v910_v17  ;;  %1047 = vst [vmem:[#allocation2 + $0x2c] sm:$0x1] %v1046_v26  ;;  %2480 = vmatprep.mubr.msk.bf16.mxu0 (!%p2330_p11), %vm2713_vm4, %v2712_v33  ;;  %2479 = vmatpush3.bf16.msra.mxu0 (!%p2330_p11), %v1099_v34 }
 0x120   : > { %v978_v61 = vsel %vm3005_vm14, %v970_v28, %v977_v56  ;;  %v1074_v30 = vsel %vm3013_vm15, %v979_v29, %v1073_v22 }
 0x121   : > { %1072 = vst.msk [vmem:[#allocation2 + $0x58] sm:$0xf] %vm501_vm1, %v978_v61  ;;  %1075 = vst [vmem:[#allocation2 + $0x5c] sm:$0x1] %v1074_v30 }
 0x122   : > { %2481 = vmatmul.mubr.msk.bf16.vlgmr.msra.gmra.mrb[0].mxu0 %vm590_vm2, %v2649_v11 }
 0x1f5   : > { %v1135_v35 = vpop.f32.mrb[0].mxu0 }
 0x1f6   : > { %v1149_v37 = vmul.f32 %v2333_v62, %v1135_v35  ;;  %v2482_v40 = vpop.f32.mrb[1].mxu0 }
 0x1f7   : > { %v1138_v41 = vpop.f32.mrb[2].mxu0 }
 0x1f8   : > { %v1158_v25 = vadd.f32 %v2334_v36, %v1149_v37  ;;  %v1150_v42 = vmul.f32 %v2333_v62, %v1138_v41  ;;  %v2483_v43 = vpop.f32.mrb[3].mxu0 }
 0x1fa   : > { %vm1160_vm5 = vcmp.gt.f32.partialorder %v1158_v25, 0.0  ;;  %v1162_v31 = vmul.f32 0.01, %v1158_v25  ;;  %v1159_v46 = vadd.f32 %v2334_v36, %v1150_v42 }
 0x1fc   : > { %v1164_v48 = vsel %vm1160_vm5, %v1158_v25, %v1162_v31  ;;  %vm1161_vm3 = vcmp.gt.f32.partialorder %v1159_v46, 0.0  ;;  %v1163_v51 = vmul.f32 0.01, %v1159_v46 }
 0x1fd   : > { %v2416_v52 = vpack.c.bf16 %v1164_v48, %v1164_v48 }
 0x1fe   : > { %v1165_v53 = vsel %vm1161_vm3, %v1159_v46, %v1163_v51 }
 0x1ff   : > { %v1173_v16 = vshrl.u32 %v2416_v52, 16  ;;  %v2417_v57 = vpack.c.bf16 %v1165_v53, %v1165_v53  ;;  %v1176_v54 = vshll.u32 %v2416_v52, 16 }
 0x201   : > { %v1175_v27 = vrot.slane %v1173_v16, 7  ;;  %v1181_v13 = vshrl.u32 %v2417_v57, 16  ;;  %v1184_v50 = vshll.u32 %v2417_v57, 16 }
 0x203   : > { %v1178_v58 = vor.u32 %v1176_v54, %v1175_v27  ;;  %v1183_v59 = vrot.slane %v1181_v13, 7  ;;  %v1179_v63 = vrot.slane %v1175_v27, 4 }
 0x205   : > { %v1193_v0 = vsel %vm2980_vm12, %v1178_v58, %v1192_v44  ;;  %v1186_v45 = vor.u32 %v1184_v50, %v1183_v59  ;;  %v1188_v49 = vrot.slane %v1183_v59, 4 }
 0x206   : > { %1194 = vst [vmem:[#allocation2] sm:$0xf] %v1193_v0 }
 0x207   : > { %v1187_v1 = vsel %vm3005_vm14, %v1179_v63, %v1186_v45  ;;  %v1197_v47 = vsel %vm3013_vm15, %v1188_v49, %v1196_v60 }
 0x208   : > { %1195 = vst.msk [vmem:[#allocation2 + $0x4] sm:$0xf] %vm501_vm1, %v1187_v1  ;;  %1198 = vst [vmem:[#allocation2 + $0x8] sm:$0x1] %v1197_v47 }
 0x209 PF: > { %p2337_p12 = scmp.ge.s32.totalorder %s2693_s30, 1 }
 0x20a   : > { %v1205_v2 = vld [vmem:[%s3417_s3] sm:$0x3] (!%p2337_p12)  ;;  %v2714_v12 = vmov (!%p2337_p12), 0.0   ;;  %vm2715_vm6 = vmmov (!%p2337_p12), 0   ;;  %v1309_v36 = vld [vmem:[#allocation2 + $0x6c] sm:$0xf] (!%p2337_p12) }
 0x20b   : > { %1202 = sbr.rel (%p2337_p12) target bundleno = 758 (0x2f6), region = 64  ;;  %2484 = vmatprep.subr.bf16.mxu0 (!%p2337_p12), %v2714_v12  ;;  %v1215_v15 = vsel (!%p2337_p12), %vm615_vm0, %v1205_v2, 0  ;;  %2486 = vmatprep.mubr.msk.bf16.mxu0 (!%p2337_p12), %vm2715_vm6, %v2714_v12  ;;  %v2650_v18 = vld [vmem:[%s484_s18] sm:$0xff] (!%p2337_p12)   ;;  %v1313_v25 = vld [vmem:[#allocation2 + $0x74] sm:$0x1] (!%p2337_p12) }
 0x20c   : > { %2485 = vmatpush3.bf16.msra.mxu0 (!%p2337_p12), %v1215_v15  ;;  %v2340_v19 = vld [vmem:[%s3418_s4] ss:$0 sm:$0xff] (!%p2337_p12) }
 0x20d   : > { %v2341_v21 = vld [vmem:[%s3419_s5] ss:$0 sm:$0xff] (!%p2337_p12) }
 0x20f   : > { %2487 = vmatmul.mubr.msk.bf16.vlgmr.msra.gmra.mrb[0].mxu0 (!%p2337_p12), %vm590_vm2, %v2650_v18 }
 0x2e2   : > { %v1251_v20 = vpop.f32.mrb[0].mxu0 }
 0x2e3   : > { %v1265_v55 = vmul.f32 %v2340_v19, %v1251_v20  ;;  %v2488_v23 = vpop.f32.mrb[1].mxu0 }
 0x2e4   : > { %v1254_v24 = vpop.f32.mrb[2].mxu0 }
 0x2e5   : > { %v1274_v17 = vadd.f32 %v2341_v21, %v1265_v55  ;;  %v1266_v26 = vmul.f32 %v2340_v19, %v1254_v24  ;;  %v2489_v22 = vpop.f32.mrb[3].mxu0 }
 0x2e7   : > { %vm1276_vm0 = vcmp.gt.f32.partialorder %v1274_v17, 0.0  ;;  %v1278_v28 = vmul.f32 0.01, %v1274_v17  ;;  %v1275_v56 = vadd.f32 %v2341_v21, %v1266_v26 }
 0x2e9   : > { %v1280_v29 = vsel %vm1276_vm0, %v1274_v17, %v1278_v28  ;;  %vm1277_vm7 = vcmp.gt.f32.partialorder %v1275_v56, 0.0  ;;  %v1279_v61 = vmul.f32 0.01, %v1275_v56 }
 0x2ea   : > { %v2418_v30 = vpack.c.bf16 %v1280_v29, %v1280_v29 }
 0x2eb   : > { %v1281_v32 = vsel %vm1277_vm7, %v1275_v56, %v1279_v61 }
 0x2ec   : > { %v1289_v33 = vshrl.u32 %v2418_v30, 16  ;;  %v2419_v34 = vpack.c.bf16 %v1281_v32, %v1281_v32  ;;  %v1292_v62 = vshll.u32 %v2418_v30, 16 }
 0x2ee   : > { %v1291_v11 = vrot.slane %v1289_v33, 7  ;;  %v1297_v35 = vshrl.u32 %v2419_v34, 16  ;;  %v1300_v41 = vshll.u32 %v2419_v34, 16 }
 0x2f0   : > { %v1294_v37 = vor.u32 %v1292_v62, %v1291_v11  ;;  %v1299_v40 = vrot.slane %v1297_v35, 7  ;;  %v1295_v42 = vrot.slane %v1291_v11, 4 }
 0x2f2   : > { %v1310_v43 = vsel %vm2980_vm12, %v1294_v37, %v1309_v36  ;;  %v1302_v31 = vor.u32 %v1300_v41, %v1299_v40  ;;  %v1304_v46 = vrot.slane %v1299_v40, 4 }
 0x2f3   : > { %1311 = vst [vmem:[#allocation2 + $0x6c] sm:$0xf] %v1310_v43 }
 0x2f4   : > { %v1303_v48 = vsel %vm3005_vm14, %v1295_v42, %v1302_v31  ;;  %v1314_v51 = vsel %vm3013_vm15, %v1304_v46, %v1313_v25 }
 0x2f5   : > { %1312 = vst.msk [vmem:[#allocation2 + $0x70] sm:$0xf] %vm501_vm1, %v1303_v48  ;;  %1315 = vst [vmem:[#allocation2 + $0x74] sm:$0x1] %v1314_v51 }
 0x2f6 PF: > { %v3149_v52 = vld [vmem:[#allocation2] sm:$0xff]   ;;  %v2652_v53 = vld [vmem:[#allocation2 + $0x8] ss:$0 sps:$4 sm:$0x11]   ;;  %vm1567_vm8 = vcmask 1046528   ;;  %v3151_v14 = vld [vmem:[#allocation2 + $0x18] sm:$0xff]  }
 0x2f7   : > { %vm1426_vm9 = vsmask.f32 7424  ;;  %v1568_v16 = vrot.slane %v3149_v52, 1  ;;  %v1569_v57 = vrot.slane %v2652_v53, 1  ;;  %v1428_v38 = vshrl.u32 %v3149_v52, 16  ;;  %v3159_v50 = vld [vmem:[#allocation2 + $0xc] sm:$0xff]  }
 0x2f8   : > { %v1430_v27 = vshll.u32 %v3149_v52, 16  ;;  %v1435_v39 = vshll.u32 %v2652_v53, 16  ;;  %v2654_v54 = vld [vmem:[#allocation2 + $0x20] ss:$0 sps:$4 sm:$0x11]   ;;  %v1452_v58 = vshrl.u32 %v3151_v14, 16 }
 0x2f9   : > { %v1570_v13 = vsel %vm1567_vm8, %v1568_v16, %v1569_v57  ;;  %v1454_v59 = vshll.u32 %v3151_v14, 16  ;;  %s2716_s27 = smov 4   ;;  %v1459_v63 = vshll.u32 %v2654_v54, 16  ;;  %v2656_v49 = vld [vmem:[#allocation2 + $0x14] ss:$0 sps:$4 sm:$0x11]  }
 0x2fa   : > { %v1432_v44 = vrot.slane %v1430_v27, 1  ;;  %1598 = vrot.lane.b32.xlu1 %v1570_v13, %s2716_s27  ;;  %v1437_v60 = vrot.slane %v1435_v39, 1  ;;  %v1440_v1 = vshrl.u32 %v3159_v50, 16  ;;  %v1442_v47 = vshll.u32 %v3159_v50, 16  ;;  %s2717_s18 = smov 2   ;;  %v3168_v24 = vld [vmem:[#allocation2 + $0x30] sm:$0xff]  }
 0x2fb   : > { %v1456_v45 = vrot.slane %v1454_v59, 1  ;;  %v1461_v2 = vrot.slane %v1459_v63, 1  ;;  %v1574_v12 = vrot.slane %v3151_v14, 1  ;;  %v1575_v15 = vrot.slane %v2654_v54, 1  ;;  %v3170_v26 = vld [vmem:[#allocation2 + $0x24] sm:$0xff]   ;;  %v3184_v41 = vld [vmem:[#allocation2 + $0x3c] sm:$0xff]  }
 0x2fc   : > { %v1433_v0 = vor.u32 %v1432_v44, %v1428_v38  ;;  %v1571_v18 = vrot.slane %v3159_v50, 1  ;;  %v1444_v21 = vrot.slane %v1442_v47, 1  ;;  %v1447_v55 = vshll.u32 %v2656_v49, 16  ;;  %v2658_v17 = vld [vmem:[#allocation2 + $0x38] ss:$0 sps:$4 sm:$0x11]  }
 0x2fd   : > { %v1457_v20 = vor.u32 %v1456_v45, %v1452_v58  ;;  %v1572_v23 = vrot.slane %v2656_v49, 1  ;;  %v1476_v29 = vshrl.u32 %v3168_v24, 16  ;;  %v1478_v61 = vshll.u32 %v3168_v24, 16  ;;  %v3176_v32 = vld [vmem:[#allocation2 + $0x48] sm:$0xff]   ;;  %v3193_v13 = vld [vmem:[#allocation2 + $0x60] sm:$0xff]  }
 0x2fe   : > { %v1438_v19 = vsel %vm1426_vm9, %v1433_v0, %v1437_v60  ;;  %v1445_v28 = vor.u32 %v1444_v21, %v1440_v1  ;;  %v1449_v56 = vrot.slane %v1447_v55, 1  ;;  %v1483_v30 = vshll.u32 %v2658_v17, 16  ;;  %v2660_v11 = vld [vmem:[#allocation2 + $0x2c] ss:$0 sps:$4 sm:$0x11]  }
 0x2ff   : > { %1547 = vrot.lane.b32.xlu0 %v1438_v19, %s2717_s18  ;;  %v1462_v22 = vsel %vm1426_vm9, %v1457_v20, %v1461_v2  ;;  %v1576_v34 = vsel %vm1567_vm8, %v1574_v12, %v1575_v15  ;;  %v1464_v62 = vshrl.u32 %v3170_v26, 16  ;;  %v1466_v35 = vshll.u32 %v3170_v26, 16  ;;  %v2662_v48 = vld [vmem:[#allocation2 + $0x50] ss:$0 sps:$4 sm:$0x11]   ;;  %v3200_v2 = vld [vmem:[#allocation2 + $0x54] sm:$0xff]  }
 0x300   : > { %1551 = vrot.lane.b32.xlu1 %v1462_v22, %s2717_s18  ;;  %v1450_v33 = vsel %vm1426_vm9, %v1445_v28, %v1449_v56  ;;  %v1573_v36 = vsel %vm1567_vm8, %v1571_v18, %v1572_v23  ;;  %v1480_v37 = vrot.slane %v1478_v61, 1  ;;  %v1485_v40 = vrot.slane %v1483_v30, 1  ;;  %v2664_v60 = vld [vmem:[#allocation2 + $0x44] ss:$0 sps:$4 sm:$0x11]  }
 0x301   : > { %v1468_v25 = vrot.slane %v1466_v35, 1  ;;  %v1471_v42 = vshll.u32 %v2660_v11, 16  ;;  %v1580_v43 = vrot.slane %v3168_v24, 1  ;;  %v1581_v31 = vrot.slane %v2658_v17, 1  ;;  %v3214_v35 = vld [vmem:[#allocation2 + $0x6c] sm:$0xff]  }
 0x302   : > { %v1481_v46 = vor.u32 %v1480_v37, %v1476_v29  ;;  %v1502_v51 = vshll.u32 %v3176_v32, 16  ;;  %v1500_v57 = vshrl.u32 %v3176_v32, 16  ;;  %v1507_v39 = vshll.u32 %v2662_v48, 16  ;;  %v2666_v12 = vld [vmem:[#allocation2 + $0x68] ss:$0 sps:$4 sm:$0x11]  }
 0x303   : > { %1549 = vrot.lane.b32.xlu0 %v1450_v33, %s2717_s18  ;;  %v1469_v53 = vor.u32 %v1468_v25, %v1464_v62  ;;  %v1473_v16 = vrot.slane %v1471_v42, 1  ;;  %v1490_v54 = vshll.u32 %v3184_v41, 16  ;;  %v1577_v58 = vrot.slane %v3170_v26, 1  ;;  %v2668_v23 = vld [vmem:[#allocation2 + $0x5c] ss:$0 sps:$4 sm:$0x11]  }
 0x304   : > { %1602 = vrot.lane.b32.xlu1 %v1576_v34, %s2716_s27  ;;  %v1486_v38 = vsel %vm1426_vm9, %v1481_v46, %v1485_v40  ;;  %v1504_v27 = vrot.slane %v1502_v51, 1  ;;  %v1578_v59 = vrot.slane %v2660_v11, 1  ;;  %v1488_v63 = vshrl.u32 %v3184_v41, 16  ;;  %v2364_v25 = vld [vmem:[%s3420_s6 + $0x4] sm:$0x7] }
 0x305   : > { %v1474_v44 = vsel %vm1426_vm9, %v1469_v53, %v1473_v16  ;;  %v1492_v0 = vrot.slane %v1490_v54, 1  ;;  %v1582_v45 = vsel %vm1567_vm8, %v1580_v43, %v1581_v31  ;;  %v1509_v1 = vrot.slane %v1507_v39, 1  ;;  %v1659_v42 = vld [vmem:[%s3420_s6] sm:$0x7]  ;;  %v2381_v43 = vld [vmem:[%s3420_s6 + $0x8] sm:$0x7] }
 0x306   : > { %v1505_v49 = vor.u32 %v1504_v27, %v1500_v57  ;;  %v1495_v47 = vshll.u32 %v2664_v60, 16  ;;  %v1526_v15 = vshll.u32 %v3193_v13, 16  ;;  %v1579_v18 = vsel %vm1567_vm8, %v1577_v58, %v1578_v59  ;;  %v2670_v51 = vld [vmem:[#allocation2 + $0x74] ss:$0 sps:$4 sm:$0x11]  }
 0x307   : > { %1600 = vrot.lane.b32.xlu0 %v1573_v36, %s2716_s27  ;;  %v1493_v19 = vor.u32 %v1492_v0, %v1488_v63  ;;  %v1586_v21 = vrot.slane %v3176_v32, 1  ;;  %v1531_v55 = vshll.u32 %v2666_v12, 16  ;;  %v1514_v17 = vshll.u32 %v3200_v2, 16 }
 0x308   : > { %1555 = vrot.lane.b32.xlu1 %v1486_v38, %s2717_s18  ;;  %v1497_v20 = vrot.slane %v1495_v47, 1  ;;  %v1510_v22 = vsel %vm1426_vm9, %v1505_v49, %v1509_v1  ;;  %v1587_v28 = vrot.slane %v2662_v48, 1  ;;  %v1524_v56 = vshrl.u32 %v3193_v13, 16 }
 0x309   : > { %v1528_v29 = vrot.slane %v1526_v15, 1  ;;  %v1583_v61 = vrot.slane %v3184_v41, 1  ;;  %v1584_v30 = vrot.slane %v2664_v60, 1  ;;  %v1512_v34 = vshrl.u32 %v3200_v2, 16 }
 0x30a   : > { %v1498_v33 = vsel %vm1426_vm9, %v1493_v19, %v1497_v20  ;;  %v1516_v11 = vrot.slane %v1514_v17, 1  ;;  %v1519_v62 = vshll.u32 %v2668_v23, 16  ;;  %v1533_v36 = vrot.slane %v1531_v55, 1 }
 0x30b   : > { %1553 = vrot.lane.b32.xlu0 %v1474_v44, %s2717_s18  ;;  %v1588_v37 = vsel %vm1567_vm8, %v1586_v21, %v1587_v28  ;;  %v1529_v40 = vor.u32 %v1528_v29, %v1524_v56  ;;  %v1585_v31 = vsel %vm1567_vm8, %v1583_v61, %v1584_v30  ;;  %v1538_v53 = vshll.u32 %v3214_v35, 16 }
 0x30c   : > { %1606 = vrot.lane.b32.xlu1 %v1582_v45, %s2716_s27  ;;  %v1517_v46 = vor.u32 %v1516_v11, %v1512_v34  ;;  %v1521_v48 = vrot.slane %v1519_v62, 1  ;;  %vm1679_vm1 = vcmask 1042432   ;;  %v1592_v39 = vrot.slane %v3193_v13, 1 }
 0x30d   : > { %2582 = vmatprep.subr.msk.bf16.mxu1 %vm1679_vm1, %v2364_v25  ;;  %v1681_v16 = vsel %vm1679_vm1, %v2364_v25, 0  ;;  %v1783_v57 = vsel %vm1679_vm1, %v1659_v42, 0  ;;  %v1887_v38 = vsel %vm1679_vm1, %v2381_v43, 0  ;;  %v1534_v27 = vsel %vm1426_vm9, %v1529_v40, %v1533_v36  ;;  %2583 = vmatprep.subr.msk.bf16.mxu0 %vm1679_vm1, %v1659_v42 }
 0x30e   : > { %v1593_v54 = vrot.slane %v2666_v12, 1  ;;  %2491 = vmatpush3.bf16.msra.mxu1 %v1681_v16  ;;  %v1589_v44 = vrot.slane %v3200_v2, 1  ;;  %v1590_v58 = vrot.slane %v2668_v23, 1  ;;  %2509 = vmatpush3.bf16.msra.mxu0 %v1783_v57  ;;  %v1522_v59 = vsel %vm1426_vm9, %v1517_v46, %v1521_v48 }
 0x30f   : > { %1604 = vrot.lane.b32.xlu0 %v1579_v18, %s2716_s27  ;;  %v1536_v60 = vshrl.u32 %v3214_v35, 16  ;;  %v1540_v63 = vrot.slane %v1538_v53, 1  ;;  %v1543_v0 = vshll.u32 %v2670_v51, 16  ;;  %2584 = vmatprep.subr.msk.bf16.mxu1 %vm1679_vm1, %v1659_v42  ;;  %v1595_v49 = vrot.slane %v3214_v35, 1 }
 0x310   : > { %1559 = vrot.lane.b32.xlu1 %v1510_v22, %s2717_s18  ;;  %2585 = vmatprep.subr.msk.bf16.mxu0 %vm1679_vm1, %v2381_v43  ;;  %v1594_v45 = vsel %vm1567_vm8, %v1592_v39, %v1593_v54  ;;  %v1596_v1 = vrot.slane %v2670_v51, 1  ;;  %v1591_v47 = vsel %vm1567_vm8, %v1589_v44, %v1590_v58  ;;  %vm1618_vm12 = vcmask 15360  }
 0x311   : > { %v1541_v12 = vor.u32 %v1540_v63, %v1536_v60  ;;  %v1545_v15 = vrot.slane %v1543_v0, 1  ;;  %vm1662_vm14 = vcmask 48128  }
 0x312   : > { %v1597_v18 = vsel %vm1567_vm8, %v1595_v49, %v1596_v1  ;;  %v3312_v1 = vld [vmem:[%s3421_s7] ss:$0 sm:$0xff] }
 0x313   : > { %1557 = vrot.lane.b32.xlu0 %v1498_v33, %s2717_s18  ;;  %v1546_v19 = vsel %vm1426_vm9, %v1541_v12, %v1545_v15  ;;  %v3317_v12 = vld [vmem:[%s3422_s8] ss:$0 sm:$0xff] }
 0x314   : > { %1610 = vrot.lane.b32.xlu1 %v1588_v37, %s2716_s27 }
 0x317   : > { %1608 = vrot.lane.b32.xlu0 %v1585_v31, %s2716_s27 }
 0x318   : > { %1563 = vrot.lane.b32.xlu1 %v1534_v27, %s2717_s18 }
 0x31b   : > { %1561 = vrot.lane.b32.xlu0 %v1522_v59, %s2717_s18 }
 0x31c   : > { %1614 = vrot.lane.b32.xlu1 %v1594_v45, %s2716_s27 }
 0x31f   : > { %1612 = vrot.lane.b32.xlu0 %v1591_v47, %s2716_s27 }
 0x320   : > { %1616 = vrot.lane.b32.xlu1 %v1597_v18, %s2716_s27 }
 0x323   : > { %1565 = vrot.lane.b32.xlu0 %v1546_v19, %s2717_s18 }
 0x36c   : > { %v1599_v20 = vpop.permute.xlu1 %1598 }
 0x371   : > { %v1548_v21 = vpop.permute.xlu0 %1547 }
 0x372   : > { %v1620_v55 = vsel %vm1618_vm12, %v3149_v52, %v1548_v21  ;;  %v1552_v23 = vpop.permute.xlu1 %1551 }
 0x373   : > { %v1640_v17 = vsel %vm590_vm2, %v1620_v55, %v1599_v20  ;;  %v1624_v56 = vsel %vm1618_vm12, %v3151_v14, %v1552_v23 }
 0x374   : > { %2510 = vmatprep.mubr.msk.bf16.mxu0 %vm1662_vm14, %v1640_v17 }
 0x375   : > { %v1550_v22 = vpop.permute.xlu0 %1549 }
 0x376   : > { %v1603_v28 = vpop.permute.xlu1 %1602  ;;  %v1622_v61 = vsel %vm1618_vm12, %v3159_v50, %v1550_v22 }
 0x377   : > { %v1644_v33 = vsel %vm590_vm2, %v1624_v56, %v1603_v28  ;;  %v2098_v28 = vunpack.c.l.bf16 %v2872_v5 }
 0x379   : > { %v1601_v29 = vpop.permute.xlu0 %1600 }
 0x37a   : > { %v1642_v30 = vsel %vm590_vm2, %v1622_v61, %v1601_v29  ;;  %v1556_v34 = vpop.permute.xlu1 %1555  ;;  %v2096_v29 = vunpack.c.l.bf16 %v2868_v3 }
 0x37b   : > { %2492 = vmatprep.mubr.msk.bf16.mxu1 %vm1662_vm14, %v1642_v30  ;;  %2511 = vmatmul.mubr.msk.bf16.vlgmr.msra.gmra.mrb[0].mxu0 %vm1662_vm14, %v1642_v30  ;;  %v1628_v50 = vsel %vm1618_vm12, %v3168_v24, %v1556_v34  ;;  %v2099_v34 = vunpack.c.h.bf16 %v2872_v5 }
 0x37c   : > { %2493 = vmatmul.mubr.msk.bf16.vlgmr.msra.gmra.mrb[0].mxu1 %vm1662_vm14, %v1644_v33  ;;  %2514 = vmatprep.mubr.msk.bf16.mxu0 %vm1662_vm14, %v1644_v33 }
 0x37d   : > { %2547 = vmatpush3.bf16.msra.mxu1 %v1783_v57  ;;  %2527 = vmatpush3.bf16.msra.mxu0 %v1887_v38  ;;  %v1554_v52 = vpop.permute.xlu0 %1553 }
 0x37e   : > { %v1607_v14 = vpop.permute.xlu1 %1606  ;;  %v1626_v11 = vsel %vm1618_vm12, %v3170_v26, %v1554_v52 }
 0x37f   : > { %v1648_v37 = vsel %vm590_vm2, %v1628_v50, %v1607_v14  ;;  %v2097_v50 = vunpack.c.h.bf16 %v2868_v3 }
 0x381   : > { %v1605_v62 = vpop.permute.xlu0 %1604 }
 0x382   : > { %v1646_v36 = vsel %vm590_vm2, %v1626_v11, %v1605_v62  ;;  %v1560_v40 = vpop.permute.xlu1 %1559 }
 0x383   : > { %2496 = vmatprep.mubr.msk.bf16.mxu1 %vm1662_vm14, %v1646_v36  ;;  %2515 = vmatmul.mubr.msk.bf16.gmra.mrb[4].mxu0 %vm1662_vm14, %v1646_v36  ;;  %v1632_v24 = vsel %vm1618_vm12, %v3176_v32, %v1560_v40 }
 0x384   : > { %2497 = vmatmul.mubr.msk.bf16.gmra.mrb[4].mxu1 %vm1662_vm14, %v1648_v37  ;;  %2528 = vmatprep.mubr.msk.bf16.mxu0 %vm1662_vm14, %v1644_v33 }
 0x385   : > { %v1558_v25 = vpop.permute.xlu0 %1557 }
 0x386   : > { %v1611_v42 = vpop.permute.xlu1 %1610  ;;  %v1630_v26 = vsel %vm1618_vm12, %v3184_v41, %v1558_v25 }
 0x387   : > { %v1652_v46 = vsel %vm590_vm2, %v1632_v24, %v1611_v42 }
 0x389   : > { %v1609_v43 = vpop.permute.xlu0 %1608 }
 0x38a   : > { %v1650_v31 = vsel %vm590_vm2, %v1630_v26, %v1609_v43  ;;  %v1564_v48 = vpop.permute.xlu1 %1563 }
 0x38b   : > { %2500 = vmatprep.mubr.msk.bf16.mxu1 %vm1662_vm14, %v1650_v31  ;;  %2529 = vmatmul.mubr.msk.bf16.vlgmr.msra.gmra.mrb[0].mxu0 %vm1662_vm14, %v1646_v36  ;;  %v1636_v32 = vsel %vm1618_vm12, %v3193_v13, %v1564_v48 }
 0x38c   : > { %2501 = vmatmul.mubr.msk.bf16.gmra.mrb[8].mxu1 %vm1662_vm14, %v1652_v46  ;;  %2532 = vmatprep.mubr.msk.bf16.mxu0 %vm1662_vm14, %v1648_v37 }
 0x38d   : > { %v1562_v51 = vpop.permute.xlu0 %1561 }
 0x38e   : > { %v1615_v53 = vpop.permute.xlu1 %1614  ;;  %v1634_v41 = vsel %vm1618_vm12, %v3200_v2, %v1562_v51 }
 0x38f   : > { %v1656_v38 = vsel %vm590_vm2, %v1636_v32, %v1615_v53 }
 0x391   : > { %v1613_v16 = vpop.permute.xlu0 %1612 }
 0x392   : > { %v1654_v57 = vsel %vm590_vm2, %v1634_v41, %v1613_v16  ;;  %v1617_v2 = vpop.permute.xlu1 %1616 }
 0x393   : > { %2504 = vmatprep.mubr.msk.bf16.mxu1 %vm1662_vm14, %v1654_v57  ;;  %2533 = vmatmul.mubr.msk.bf16.gmra.mrb[4].mxu0 %vm1662_vm14, %v1650_v31 }
 0x394   : > { %2505 = vmatmul.mubr.msk.bf16.gmra.mrb[12].mxu1 %vm1662_vm14, %v1656_v38  ;;  %2536 = vmatprep.mubr.msk.bf16.mxu0 %vm1662_vm14, %v1652_v46 }
 0x395   : > { %2518 = vmatprep.mubr.msk.bf16.mxu1 %vm1662_vm14, %v1648_v37  ;;  %v1566_v13 = vpop.permute.xlu0 %1565 }
 0x396   : > { %v1638_v27 = vsel %vm1618_vm12, %v3214_v35, %v1566_v13 }
 0x397   : > { %v1658_v39 = vsel %vm590_vm2, %v1638_v27, %v1617_v2 }
 0x39b   : > { %2537 = vmatmul.mubr.msk.bf16.gmra.mrb[8].mxu0 %vm1662_vm14, %v1654_v57 }
 0x39c   : > { %2519 = vmatmul.mubr.msk.bf16.vlgmr.msra.gmra.mrb[8].mxu1 %vm1662_vm14, %v1650_v31  ;;  %2540 = vmatprep.mubr.msk.bf16.mxu0 %vm1662_vm14, %v1656_v38  ;;  %v2102_v38 = vunpack.c.l.bf16 %v2897_v9 }
 0x39d   : > { %2522 = vmatprep.mubr.msk.bf16.mxu1 %vm1662_vm14, %v1652_v46 }
 0x3a3   : > { %2541 = vmatmul.mubr.msk.bf16.gmra.mrb[12].mxu0 %vm1662_vm14, %v1658_v39 }
 0x3a4   : > { %2523 = vmatmul.mubr.msk.bf16.gmra.mrb[12].mxu1 %vm1662_vm14, %v1654_v57 }
 0x44f   : > { %v2494_v54 = vpop.f32.mrb[0].mxu1 }
 0x450   : > { %v1717_v44 = vpop.f32.mrb[1].mxu1 }
 0x451   : > { %v2495_v58 = vpop.f32.mrb[2].mxu1 }
 0x452   : > { %v1720_v59 = vpop.f32.mrb[3].mxu1 }
 0x457   : > { %v2498_v60 = vpop.f32.mrb[4].mxu1 }
 0x458   : > { %v1733_v63 = vpop.f32.mrb[5].mxu1 }
 0x459   : > { %v2499_v0 = vpop.f32.mrb[6].mxu1 }
 0x45a   : > { %v1736_v45 = vpop.f32.mrb[7].mxu1 }
 0x45e   : > { %v2530_v49 = vpop.f32.mrb[0].mxu0 }
 0x45f   : > { %v2548_v35 = vadd.f32 %v2530_v49, %v2494_v54  ;;  %v1923_v47 = vpop.f32.mrb[1].mxu0  ;;  %v2100_v54 = vunpack.c.l.bf16 %v2876_v7 }
 0x460   : > { %v2549_v15 = vadd.f32 %v1923_v47, %v1717_v44  ;;  %v2531_v18 = vpop.f32.mrb[2].mxu0 }
 0x461   : > { %v2011_v19 = vmul.f32 %v2548_v35, %v3312_v1  ;;  %v2550_v20 = vadd.f32 %v2531_v18, %v2495_v58  ;;  %v1926_v21 = vpop.f32.mrb[3].mxu0  ;;  %v2103_v58 = vunpack.c.h.bf16 %v2897_v9 }
 0x462   : > { %v2009_v55 = vmul.f32 %v2549_v15, %v3312_v1  ;;  %v2551_v23 = vadd.f32 %v1926_v21, %v1720_v59 }
 0x463   : > { %v2034_v17 = vadd.f32 %v3317_v12, %v2011_v19  ;;  %v2012_v22 = vmul.f32 %v2550_v20, %v3312_v1 }
 0x464   : > { %v2032_v56 = vadd.f32 %v3317_v12, %v2009_v55  ;;  %v2010_v61 = vmul.f32 %v2551_v23, %v3312_v1 }
 0x465   : > { %vm2050_vm15 = vcmp.gt.f32.partialorder %v2034_v17, 0.0  ;;  %v2066_v30 = vmul.f32 0.01, %v2034_v17  ;;  %v2035_v33 = vadd.f32 %v3317_v12, %v2012_v22 }
 0x466   : > { %vm2048_vm10 = vcmp.gt.f32.partialorder %v2032_v56, 0.0  ;;  %v2064_v52 = vmul.f32 0.01, %v2032_v56  ;;  %v2033_v14 = vadd.f32 %v3317_v12, %v2010_v61  ;;  %v2534_v11 = vpop.f32.mrb[4].mxu0 }
 0x467   : > { %v2082_v62 = vsel %vm2050_vm15, %v2034_v17, %v2066_v30  ;;  %vm2051_vm11 = vcmp.gt.f32.partialorder %v2035_v33, 0.0  ;;  %v2067_v36 = vmul.f32 0.01, %v2035_v33  ;;  %v2552_v37 = vadd.f32 %v2534_v11, %v2498_v60  ;;  %v1939_v40 = vpop.f32.mrb[5].mxu0 }
 0x468   : > { %v2114_v25 = vadd.f32 %v2098_v28, %v2082_v62  ;;  %v2080_v42 = vsel %vm2048_vm10, %v2032_v56, %v2064_v52  ;;  %vm2049_vm13 = vcmp.gt.f32.partialorder %v2033_v14, 0.0  ;;  %v2065_v24 = vmul.f32 0.01, %v2033_v14  ;;  %v2535_v5 = vpop.f32.mrb[6].mxu0 }
 0x469   : > { %v2112_v26 = vadd.f32 %v2096_v29, %v2080_v42  ;;  %v2083_v43 = vsel %vm2051_vm11, %v2035_v33, %v2067_v36  ;;  %v2015_v31 = vmul.f32 %v2552_v37, %v3312_v1  ;;  %v2553_v3 = vadd.f32 %v1939_v40, %v1733_v63  ;;  %v1942_v46 = vpop.f32.mrb[7].mxu0 }
 0x46a   : > { %2130 = vst.msk [vmem:[%s2887_s19 + $0x10] sm:$0xff] %vm590_vm2, %v2114_v25  ;;  %v2115_v48 = vadd.f32 %v2099_v34, %v2083_v43  ;;  %v2081_v51 = vsel %vm2049_vm13, %v2033_v14, %v2065_v24  ;;  %v2554_v32 = vadd.f32 %v2535_v5, %v2499_v0  ;;  %v2555_v53 = vadd.f32 %v1942_v46, %v1736_v45 }
 0x46b   : > { %2128 = vst.msk [vmem:[%s2887_s19] sm:$0xff] %vm590_vm2, %v2112_v26  ;;  %v2113_v41 = vadd.f32 %v2097_v50, %v2081_v51  ;;  %v2038_v16 = vadd.f32 %v3317_v12, %v2015_v31  ;;  %v2013_v57 = vmul.f32 %v2553_v3, %v3312_v1  ;;  %v2101_v45 = vunpack.c.h.bf16 %v2876_v7 }
 0x46c   : > { %2131 = vst.msk [vmem:[%s2887_s19 + $0x18] sm:$0xff] %vm590_vm2, %v2115_v48  ;;  %v2016_v13 = vmul.f32 %v2554_v32, %v3312_v1  ;;  %v2014_v2 = vmul.f32 %v2555_v53, %v3312_v1  ;;  %v2106_v11 = vunpack.c.l.bf16 %v2874_v6  ;;  %v2104_v36 = vunpack.c.l.bf16 %v2870_v4 }
 0x46d   : > { %2129 = vst.msk [vmem:[%s2887_s19 + $0x8] sm:$0xff] %vm590_vm2, %v2113_v41  ;;  %vm2054_vm4 = vcmp.gt.f32.partialorder %v2038_v16, 0.0  ;;  %v2070_v27 = vmul.f32 0.01, %v2038_v16  ;;  %v2036_v39 = vadd.f32 %v3317_v12, %v2013_v57  ;;  %v2107_v40 = vunpack.c.h.bf16 %v2874_v6 }
 0x46e   : > { %v2039_v44 = vadd.f32 %v3317_v12, %v2016_v13  ;;  %v2037_v59 = vadd.f32 %v3317_v12, %v2014_v2  ;;  %v2538_v60 = vpop.f32.mrb[8].mxu0  ;;  %v2105_v51 = vunpack.c.h.bf16 %v2870_v4 }
 0x46f   : > { %v2086_v63 = vsel %vm2054_vm4, %v2038_v16, %v2070_v27  ;;  %vm2052_vm5 = vcmp.gt.f32.partialorder %v2036_v39, 0.0  ;;  %v2068_v0 = vmul.f32 0.01, %v2036_v39  ;;  %v2520_v49 = vpop.f32.mrb[8].mxu1  ;;  %v1955_v35 = vpop.f32.mrb[9].mxu0 }
 0x470   : > { %v2118_v47 = vadd.f32 %v2102_v38, %v2086_v63  ;;  %vm2055_vm3 = vcmp.gt.f32.partialorder %v2039_v44, 0.0  ;;  %v2071_v15 = vmul.f32 0.01, %v2039_v44  ;;  %vm2053_vm6 = vcmp.gt.f32.partialorder %v2037_v59, 0.0  ;;  %v1851_v18 = vpop.f32.mrb[9].mxu1  ;;  %v2539_v19 = vpop.f32.mrb[10].mxu0 }
 0x471   : > { %v2084_v20 = vsel %vm2052_vm5, %v2036_v39, %v2068_v0  ;;  %v2069_v9 = vmul.f32 0.01, %v2037_v59  ;;  %v2556_v21 = vadd.f32 %v2538_v60, %v2520_v49  ;;  %v2557_v55 = vadd.f32 %v1955_v35, %v1851_v18  ;;  %v2521_v23 = vpop.f32.mrb[10].mxu1  ;;  %v1958_v17 = vpop.f32.mrb[11].mxu0 }
 0x472   : > { %2134 = vst.msk [vmem:[%s2887_s19 + $0x30] sm:$0xff] %vm590_vm2, %v2118_v47  ;;  %v2116_v22 = vadd.f32 %v2100_v54, %v2084_v20  ;;  %v2087_v7 = vsel %vm2055_vm3, %v2039_v44, %v2071_v15  ;;  %v2558_v28 = vadd.f32 %v2539_v19, %v2521_v23  ;;  %v1854_v56 = vpop.f32.mrb[11].mxu1  ;;  %v2108_v18 = vunpack.c.l.bf16 %v2878_v8 }
 0x473   : > { %v2119_v29 = vadd.f32 %v2103_v58, %v2087_v7  ;;  %v2085_v61 = vsel %vm2053_vm6, %v2037_v59, %v2069_v9  ;;  %v2019_v30 = vmul.f32 %v2556_v21, %v3312_v1  ;;  %v2017_v33 = vmul.f32 %v2557_v55, %v3312_v1 }
 0x474   : > { %2132 = vst.msk [vmem:[%s2887_s19 + $0x20] sm:$0xff] %vm590_vm2, %v2116_v22  ;;  %v2117_v34 = vadd.f32 %v2101_v45, %v2085_v61  ;;  %v2020_v52 = vmul.f32 %v2558_v28, %v3312_v1  ;;  %v2559_v14 = vadd.f32 %v1958_v17, %v1854_v56  ;;  %v2110_v45 = vunpack.c.l.bf16 %v2899_v10 }
 0x475   : > { %2135 = vst.msk [vmem:[%s2887_s19 + $0x38] sm:$0xff] %vm590_vm2, %v2119_v29  ;;  %v2042_v50 = vadd.f32 %v3317_v12, %v2019_v30  ;;  %v2040_v62 = vadd.f32 %v3317_v12, %v2017_v33  ;;  %v2111_v20 = vunpack.c.h.bf16 %v2899_v10  ;;  %v2109_v55 = vunpack.c.h.bf16 %v2878_v8 }
 0x476   : > { %2133 = vst.msk [vmem:[%s2887_s19 + $0x28] sm:$0xff] %vm590_vm2, %v2117_v34  ;;  %v2043_v37 = vadd.f32 %v3317_v12, %v2020_v52  ;;  %v2018_v25 = vmul.f32 %v2559_v14, %v3312_v1  ;;  %v2542_v42 = vpop.f32.mrb[12].mxu0 }
 0x477   : > { %vm2058_vm0 = vcmp.gt.f32.partialorder %v2042_v50, 0.0  ;;  %v2074_v24 = vmul.f32 0.01, %v2042_v50  ;;  %vm2056_vm7 = vcmp.gt.f32.partialorder %v2040_v62, 0.0  ;;  %v2072_v5 = vmul.f32 0.01, %v2040_v62 }
 0x478   : > { %vm2059_vm8 = vcmp.gt.f32.partialorder %v2043_v37, 0.0  ;;  %v2075_v26 = vmul.f32 0.01, %v2043_v37  ;;  %v2041_v43 = vadd.f32 %v3317_v12, %v2018_v25  ;;  %v2524_v31 = vpop.f32.mrb[12].mxu1  ;;  %v1971_v3 = vpop.f32.mrb[13].mxu0 }
 0x479   : > { %v2090_v46 = vsel %vm2058_vm0, %v2042_v50, %v2074_v24  ;;  %v2088_v48 = vsel %vm2056_vm7, %v2040_v62, %v2072_v5  ;;  %v2560_v6 = vadd.f32 %v2542_v42, %v2524_v31  ;;  %v1867_v32 = vpop.f32.mrb[13].mxu1  ;;  %v2543_v53 = vpop.f32.mrb[14].mxu0 }
 0x47a   : > { %v2122_v41 = vadd.f32 %v2106_v11, %v2090_v46  ;;  %v2120_v16 = vadd.f32 %v2104_v36, %v2088_v48  ;;  %v2091_v57 = vsel %vm2059_vm8, %v2043_v37, %v2075_v26  ;;  %vm2057_vm9 = vcmp.gt.f32.partialorder %v2041_v43, 0.0  ;;  %v2525_v38 = vpop.f32.mrb[14].mxu1  ;;  %v1974_v13 = vpop.f32.mrb[15].mxu0 }
 0x47b   : > { %v2123_v2 = vadd.f32 %v2107_v40, %v2091_v57  ;;  %v2073_v27 = vmul.f32 0.01, %v2041_v43  ;;  %v2023_v39 = vmul.f32 %v2560_v6, %v3312_v1  ;;  %v2561_v54 = vadd.f32 %v1971_v3, %v1867_v32  ;;  %v1870_v44 = vpop.f32.mrb[15].mxu1 }
 0x47c   : > { %2138 = vst.msk [vmem:[%s2887_s19 + $0x50] sm:$0xff] %vm590_vm2, %v2122_v41  ;;  %2136 = vst.msk [vmem:[%s2887_s19 + $0x40] sm:$0xff] %vm590_vm2, %v2120_v16  ;;  %v2562_v4 = vadd.f32 %v2543_v53, %v2525_v38  ;;  %v2563_v58 = vadd.f32 %v1974_v13, %v1870_v44 }
 0x47d   : > { %2139 = vst.msk [vmem:[%s2887_s19 + $0x58] sm:$0xff] %vm590_vm2, %v2123_v2  ;;  %v2089_v59 = vsel %vm2057_vm9, %v2041_v43, %v2073_v27  ;;  %v2046_v60 = vadd.f32 %v3317_v12, %v2023_v39  ;;  %v2021_v63 = vmul.f32 %v2561_v54, %v3312_v1 }
 0x47e   : > { %v2121_v0 = vadd.f32 %v2105_v51, %v2089_v59  ;;  %v2024_v49 = vmul.f32 %v2562_v4, %v3312_v1  ;;  %v2022_v35 = vmul.f32 %v2563_v58, %v3312_v1 }
 0x47f   : > { %vm2062_vm1 = vcmp.gt.f32.partialorder %v2046_v60, 0.0  ;;  %v2078_v47 = vmul.f32 0.01, %v2046_v60  ;;  %v2044_v15 = vadd.f32 %v3317_v12, %v2021_v63 }
 0x480   : > { %2137 = vst.msk [vmem:[%s2887_s19 + $0x48] sm:$0xff] %vm590_vm2, %v2121_v0  ;;  %v2047_v19 = vadd.f32 %v3317_v12, %v2024_v49  ;;  %v2045_v9 = vadd.f32 %v3317_v12, %v2022_v35 }
 0x481   : > { %v2094_v21 = vsel %vm2062_vm1, %v2046_v60, %v2078_v47  ;;  %vm2060_vm12 = vcmp.gt.f32.partialorder %v2044_v15, 0.0  ;;  %v2076_v1 = vmul.f32 0.01, %v2044_v15 }
 0x482   : > { %v2126_v23 = vadd.f32 %v2110_v45, %v2094_v21  ;;  %vm2063_vm14 = vcmp.gt.f32.partialorder %v2047_v19, 0.0  ;;  %v2079_v17 = vmul.f32 0.01, %v2047_v19  ;;  %vm2061_vm15 = vcmp.gt.f32.partialorder %v2045_v9, 0.0 }
 0x483   : > { %v2092_v22 = vsel %vm2060_vm12, %v2044_v15, %v2076_v1  ;;  %v2077_v7 = vmul.f32 0.01, %v2045_v9 }
 0x484   : > { %2142 = vst.msk [vmem:[%s2887_s19 + $0x70] sm:$0xff] %vm590_vm2, %v2126_v23  ;;  %v2124_v28 = vadd.f32 %v2108_v18, %v2092_v22  ;;  %v2095_v10 = vsel %vm2063_vm14, %v2047_v19, %v2079_v17 }
 0x485   : > { %v2127_v56 = vadd.f32 %v2111_v20, %v2095_v10  ;;  %v2093_v12 = vsel %vm2061_vm15, %v2045_v9, %v2077_v7 }
 0x486   : > { %2140 = vst.msk [vmem:[%s2887_s19 + $0x60] sm:$0xff] %vm590_vm2, %v2124_v28  ;;  %v2125_v29 = vadd.f32 %v2109_v55, %v2093_v12 }
 0x487   : > { %2143 = vst.msk [vmem:[%s2887_s19 + $0x78] sm:$0xff] %vm590_vm2, %v2127_v56 }
 0x488   : > { %2141 = vst.msk [vmem:[%s2887_s19 + $0x68] sm:$0xff] %vm590_vm2, %v2125_v29 }
 0x489 PF: > { %s19_s13 = sadd.s32 1, %s2709_s13   ;;  %s3431_s30 = smov %s2701_s11 }
 0x48a   : > { %p16_p13 = scmp.ge.s32.totalorder %s19_s13, 6   ;;  %s3432_s10 = smov %s2705_s12 }
 0x48b   : > { %s3433_s11 = smov %s3436_s14  ;;  %s3434_s12 = smov %s3440_s15 }
 0x48c   :  { %18 = sbr.rel (!%p16_p13) target bundleno = 3 (0x3), region = 104 }

</bundles_post_ra>
